<compile_context>
chip_gen: v5e
topology: v5e:2x2
jax: 0.10.0
libtpu: 0.0.40
codegen_flags: <defaults>
</compile_context>

<pallas_src>
import jax
import jax.numpy as jnp
import numpy as np
from jax.experimental import pallas as pl
from jax.experimental.pallas import tpu as pltpu

KERNEL_SIZE = 100
POOL = 10
KW = KERNEL_SIZE + POOL - 1      # 109 input samples feed one pooling window
KW_PAD = 112                     # sublane-rounded window length (extra weight rows are 0)
OUT_W = 128                      # packed lane-dense output: [multi | binary | features | 0]


def _round_up(x, m):
    return (x + m - 1) // m * m


def make_cnn_kernel(l_p):
    G = POOL

    def cnn_kernel(x_ref, wc_ref, bc_ref, scale_ref, shift_ref,
                   w1_ref, b1_ref, w2_ref, b2_ref, w3_ref, b3_ref,
                   wh_ref, bh_ref, out_ref):
        x = x_ref[...]            # (TB, L_pad) raw signal tile
        wc = wc_ref[...]          # (KW_PAD, 32*G) shift-packed conv weight
        bc = bc_ref[...]          # (1, 32*G)
        scale = scale_ref[...]    # (1, 32*G) BN eval-mode scale (after ReLU)
        shift = shift_ref[...]    # (1, 32*G)

        # One iteration per pooling window: conv (all G time shifts across lanes),
        # ReLU, BN affine, max over the G lane-groups, accumulate into fc1.
        acc = None
        for p in range(l_p):
            xp = x[:, p * G:p * G + KW_PAD]                       # (TB, KW_PAD)
            yp = jnp.dot(xp, wc, preferred_element_type=jnp.float32) + bc
            yp = jnp.maximum(yp, 0.0) * scale + shift             # ReLU then BN(eval)
            mp = yp[:, 0:32]
            for g in range(1, G):                                 # MaxPool1d(10)
                mp = jnp.maximum(mp, yp[:, g * 32:(g + 1) * 32])
            part = jnp.dot(mp, w1_ref[p], preferred_element_type=jnp.float32)
            acc = part if acc is None else acc + part

        h1 = jnp.maximum(acc + b1_ref[...], 0.0)                  # fc1 (+dropout=id)
        h2 = jnp.maximum(jnp.dot(h1, w2_ref[...],
                                 preferred_element_type=jnp.float32) + b2_ref[...], 0.0)
        feat = jnp.maximum(jnp.dot(h2, w3_ref[...],
                                   preferred_element_type=jnp.float32) + b3_ref[...], 0.0)
        # Packed head: columns [0:nc]=fc4 logits, [nc]=fc_binary logit,
        # [nc+1:nc+33]=feature passthrough, rest zero. Sigmoid applied in wrapper.
        out_ref[...] = (jnp.dot(feat, wh_ref[...],
                                preferred_element_type=jnp.float32) + bh_ref[...])

    return cnn_kernel


def _choose_batch_tiling(B, batch_tile):
    """Pick (tile, padded_batch) so padding waste is small and, when it is free,
    the parallel batch axis has >=2 grid steps (keeps both v7x TCs busy)."""
    b8 = _round_up(max(B, 1), 8)
    n_tiles = max(1, -(-b8 // batch_tile))
    if n_tiles == 1 and b8 >= 16 and (b8 // 2) % 8 == 0:
        n_tiles = 2
    tb = _round_up(-(-b8 // n_tiles), 8)
    return tb, tb * n_tiles


def cnn_forward(x, params, num_classes, batch_tile=128):
    """x: (B, 1, L) float32. Returns (multi, binary, features). Eval-mode semantics."""
    B, C, L = x.shape
    assert C == 1
    t_out = L - KERNEL_SIZE + 1
    assert t_out >= POOL
    l_p = t_out // POOL
    nc = num_classes
    assert nc + 1 + 32 <= OUT_W

    tb, b_pad = _choose_batch_tiling(B, batch_tile)
    l_pad = _round_up(max(L, (l_p - 1) * POOL + KW_PAD), 128)

    # Raw signal only (no HBM im2col), zero-padded to aligned tiles.
    xs = jnp.pad(x[:, 0, :], ((0, b_pad - B), (0, l_pad - L)))

    G = POOL
    # Shift-packed conv weight: column g*32+c holds conv_w[c] delayed by g samples,
    # so a single (TB, KW_PAD) x (KW_PAD, 32*G) matmul produces all G time positions
    # of one pooling window across the MXU N dimension.
    wconv = params["conv_w"][:, 0, :].T                    # (K, 32)
    wc = jnp.zeros((KW_PAD, 32 * G), jnp.float32)
    for g in range(G):
        wc = wc.at[g:g + KERNEL_SIZE, g * 32:(g + 1) * 32].set(wconv)
    bc = jnp.tile(params["conv_b"], G)[None, :]

    eps = 1e-5
    scale = params["bn_gamma"] / jnp.sqrt(params["bn_var"] + eps)
    shift = params["bn_beta"] - params["bn_mean"] * scale
    scale = jnp.tile(scale, G)[None, :]
    shift = jnp.tile(shift, G)[None, :]

    # fc1 weight grouped per pooling window: w1[p, c, o] = fc1_w[o, c*l_p + p]
    # (torch Flatten is channel-major), so the kernel can accumulate per window.
    w1 = jnp.transpose(params["fc1_w"].reshape(128, 32, l_p), (2, 1, 0))
    b1 = params["fc1_b"][None, :]
    w2 = params["fc2_w"].T
    b2 = params["fc2_b"][None, :]
    w3 = params["fc3_w"].T
    b3 = params["fc3_b"][None, :]

    # Packed lane-dense head: fc4 | fc_binary | identity (feature passthrough) | 0.
    wh = jnp.zeros((32, OUT_W), jnp.float32)
    wh = wh.at[:, :nc].set(params["fc4_w"].T)
    wh = wh.at[:, nc].set(params["fcb_w"][0])
    wh = wh.at[:, nc + 1:nc + 1 + 32].set(jnp.eye(32, dtype=jnp.float32))
    bh = jnp.zeros((1, OUT_W), jnp.float32)
    bh = bh.at[0, :nc].set(params["fc4_b"])
    bh = bh.at[0, nc].set(params["fcb_b"][0])

    kernel = make_cnn_kernel(l_p)

    def full(arr):
        nd = arr.ndim
        return pl.BlockSpec(arr.shape, lambda b, nd=nd: (0,) * nd)

    grid_spec = pltpu.PrefetchScalarGridSpec(
        num_scalar_prefetch=0,
        grid=(b_pad // tb,),
        in_specs=[
            pl.BlockSpec((tb, l_pad), lambda b: (b, 0)),
            full(wc), full(bc), full(scale), full(shift),
            full(w1), full(b1), full(w2), full(b2), full(w3), full(b3),
            full(wh), full(bh),
        ],
        out_specs=pl.BlockSpec((tb, OUT_W), lambda b: (b, 0)),
    )

    out = pl.pallas_call(
        kernel,
        grid_spec=grid_spec,
        out_shape=jax.ShapeDtypeStruct((b_pad, OUT_W), jnp.float32),
        compiler_params=pltpu.CompilerParams(
            dimension_semantics=("parallel",)),
    )(xs, wc, bc, scale, shift, w1, b1, w2, b2, w3, b3, wh, bh)

    out = out[:B]
    multi = out[:, :nc]
    binary = jax.nn.sigmoid(out[:, nc:nc + 1])      # sigmoid applied outside the kernel
    feats = out[:, nc + 1:nc + 1 + 32]
    return multi, binary, feats


def init_params(key, input_length, num_classes):
    t_out = input_length - KERNEL_SIZE + 1
    l_p = t_out // POOL
    flat = 32 * l_p
    keys = jax.random.split(key, 12)

    def w(k, shape, s=0.05):
        return (s * jax.random.normal(k, shape)).astype(jnp.float32)

    return dict(
        conv_w=w(keys[0], (32, 1, KERNEL_SIZE)),
        conv_b=w(keys[1], (32,)),
        bn_gamma=jnp.ones((32,), jnp.float32),
        bn_beta=jnp.zeros((32,), jnp.float32),
        bn_mean=jnp.zeros((32,), jnp.float32),
        bn_var=jnp.ones((32,), jnp.float32),
        fc1_w=w(keys[2], (128, flat)),
        fc1_b=w(keys[3], (128,)),
        fc2_w=w(keys[4], (64, 128)),
        fc2_b=w(keys[5], (64,)),
        fc3_w=w(keys[6], (32, 64)),
        fc3_b=w(keys[7], (32,)),
        fc4_w=w(keys[8], (num_classes, 32)),
        fc4_b=w(keys[9], (num_classes,)),
        fcb_w=w(keys[10], (1, 32)),
        fcb_b=w(keys[11], (1,)),
    )


def reference_forward(x, params, num_classes):
    """Pure-JAX reference (eval-mode semantics), mirrors the PyTorch forward."""
    B, _, L = x.shape
    t_out = L - KERNEL_SIZE + 1
    l_p = t_out // POOL
    hi = jax.lax.Precision.HIGHEST
    idx = jnp.arange(t_out)[:, None] + jnp.arange(KERNEL_SIZE)[None, :]
    xcol = x[:, 0, :][:, idx]
    y = jnp.einsum('btk,ck->bct', xcol, params["conv_w"][:, 0, :],
                   precision=hi) + params["conv_b"][None, :, None]
    y = jnp.maximum(y, 0.0)
    eps = 1e-5
    scale = params["bn_gamma"] / jnp.sqrt(params["bn_var"] + eps)
    shift = params["bn_beta"] - params["bn_mean"] * scale
    y = y * scale[None, :, None] + shift[None, :, None]
    y = y[:, :, :l_p * POOL].reshape(B, 32, l_p, POOL).max(axis=-1)
    flat = y.reshape(B, 32 * l_p)
    h1 = jnp.maximum(jnp.dot(flat, params["fc1_w"].T, precision=hi) + params["fc1_b"], 0.0)
    h2 = jnp.maximum(jnp.dot(h1, params["fc2_w"].T, precision=hi) + params["fc2_b"], 0.0)
    feat = jnp.maximum(jnp.dot(h2, params["fc3_w"].T, precision=hi) + params["fc3_b"], 0.0)
    multi = jnp.dot(feat, params["fc4_w"].T, precision=hi) + params["fc4_b"]
    binv = jax.nn.sigmoid(jnp.dot(feat, params["fcb_w"].T, precision=hi) + params["fcb_b"])
    return multi, binv, feat


if __name__ == "__main__":
    B, L, NUM_CLASSES = 4, 200, 5   # input_length=200 -> conv out 101 -> pool 10 -> flat 320
    key = jax.random.PRNGKey(0)
    kx, kp = jax.random.split(key)
    x = jax.random.normal(kx, (B, 1, L), dtype=jnp.float32)
    params = init_params(kp, L, NUM_CLASSES)

    multi, binary, feats = cnn_forward(x, params, NUM_CLASSES)
    jax.block_until_ready((multi, binary, feats))

    rm, rb, rf = reference_forward(x, params, NUM_CLASSES)
    # In-kernel f32 dots use the default MXU precision vs HIGHEST in the reference;
    # tolerance is set accordingly (documented per the review).
    np.testing.assert_allclose(np.asarray(multi), np.asarray(rm), rtol=2e-3, atol=2e-3)
    np.testing.assert_allclose(np.asarray(binary), np.asarray(rb), rtol=2e-3, atol=2e-3)
    np.testing.assert_allclose(np.asarray(feats), np.asarray(rf), rtol=2e-3, atol=2e-3)

    print("KERNEL_OK")
</pallas_src>

<mosaic_0001>
module attributes {stable_mosaic.version = 11 : i64} {
  func.func @cnn_kernel(%arg0: i32, %arg1: memref<8x256xf32, #tpu.memory_space<vmem>>, %arg2: memref<112x320xf32, #tpu.memory_space<vmem>>, %arg3: memref<1x320xf32, #tpu.memory_space<vmem>>, %arg4: memref<1x320xf32, #tpu.memory_space<vmem>>, %arg5: memref<1x320xf32, #tpu.memory_space<vmem>>, %arg6: memref<10x32x128xf32, #tpu.memory_space<vmem>>, %arg7: memref<1x128xf32, #tpu.memory_space<vmem>>, %arg8: memref<128x64xf32, #tpu.memory_space<vmem>>, %arg9: memref<1x64xf32, #tpu.memory_space<vmem>>, %arg10: memref<64x32xf32, #tpu.memory_space<vmem>>, %arg11: memref<1x32xf32, #tpu.memory_space<vmem>>, %arg12: memref<32x128xf32, #tpu.memory_space<vmem>>, %arg13: memref<1x128xf32, #tpu.memory_space<vmem>>, %arg14: memref<8x128xf32, #tpu.memory_space<vmem>>) attributes {dimension_semantics = [#tpu.dimension_semantics<parallel>], iteration_bounds = array<i64: 1>, scalar_prefetch = 0 : i64, scratch_operands = 0 : i64, tpu.core_type = #tpu.core_type<tc>, window_params = [{transform_indices = @transform_0, window_bounds = array<i64: 8, 256>}, {pipeline_mode = #tpu.pipeline_mode<synchronous>, transform_indices = @transform_1, window_bounds = array<i64: 112, 320>}, {pipeline_mode = #tpu.pipeline_mode<synchronous>, transform_indices = @transform_2, window_bounds = array<i64: 1, 320>}, {pipeline_mode = #tpu.pipeline_mode<synchronous>, transform_indices = @transform_3, window_bounds = array<i64: 1, 320>}, {pipeline_mode = #tpu.pipeline_mode<synchronous>, transform_indices = @transform_4, window_bounds = array<i64: 1, 320>}, {pipeline_mode = #tpu.pipeline_mode<synchronous>, transform_indices = @transform_5, window_bounds = array<i64: 10, 32, 128>}, {pipeline_mode = #tpu.pipeline_mode<synchronous>, transform_indices = @transform_6, window_bounds = array<i64: 1, 128>}, {pipeline_mode = #tpu.pipeline_mode<synchronous>, transform_indices = @transform_7, window_bounds = array<i64: 128, 64>}, {pipeline_mode = #tpu.pipeline_mode<synchronous>, transform_indices = @transform_8, window_bounds = array<i64: 1, 64>}, {pipeline_mode = #tpu.pipeline_mode<synchronous>, transform_indices = @transform_9, window_bounds = array<i64: 64, 32>}, {pipeline_mode = #tpu.pipeline_mode<synchronous>, transform_indices = @transform_10, window_bounds = array<i64: 1, 32>}, {pipeline_mode = #tpu.pipeline_mode<synchronous>, transform_indices = @transform_11, window_bounds = array<i64: 32, 128>}, {pipeline_mode = #tpu.pipeline_mode<synchronous>, transform_indices = @transform_12, window_bounds = array<i64: 1, 128>}, {transform_indices = @transform_13, window_bounds = array<i64: 8, 128>}]} {
    %c0 = arith.constant 0 : index
    %c0_0 = arith.constant 0 : index
    %0 = vector.load %arg1[%c0, %c0_0] : memref<8x256xf32, #tpu.memory_space<vmem>>, vector<8x256xf32>
    %c0_1 = arith.constant 0 : index
    %c0_2 = arith.constant 0 : index
    %1 = vector.load %arg2[%c0_1, %c0_2] : memref<112x320xf32, #tpu.memory_space<vmem>>, vector<112x320xf32>
    %c0_3 = arith.constant 0 : index
    %c0_4 = arith.constant 0 : index
    %2 = vector.load %arg3[%c0_3, %c0_4] : memref<1x320xf32, #tpu.memory_space<vmem>>, vector<1x320xf32>
    %c0_5 = arith.constant 0 : index
    %c0_6 = arith.constant 0 : index
    %3 = vector.load %arg4[%c0_5, %c0_6] : memref<1x320xf32, #tpu.memory_space<vmem>>, vector<1x320xf32>
    %c0_7 = arith.constant 0 : index
    %c0_8 = arith.constant 0 : index
    %4 = vector.load %arg5[%c0_7, %c0_8] : memref<1x320xf32, #tpu.memory_space<vmem>>, vector<1x320xf32>
    %5 = vector.extract_strided_slice %0 {offsets = [0, 0], sizes = [8, 112], strides = [1, 1]} : vector<8x256xf32> to vector<8x112xf32>
    %cst = arith.constant dense<0.000000e+00> : vector<8x320xf32>
    %6 = tpu.matmul %5, %1, %cst {dimension_numbers = #tpu.dot_dimension_numbers<[1], [0], [0], [1], [0, 0, 1, 1], [], []>} : vector<8x112xf32>, vector<112x320xf32>, vector<8x320xf32> -> vector<8x320xf32>
    %7 = vector.broadcast %2 : vector<1x320xf32> to vector<8x320xf32>
    %8 = arith.addf %6, %7 : vector<8x320xf32>
    %cst_9 = arith.constant 0.000000e+00 : f32
    %9 = vector.broadcast %cst_9 : f32 to vector<8x320xf32>
    %10 = arith.maximumf %8, %9 : vector<8x320xf32>
    %11 = vector.broadcast %3 : vector<1x320xf32> to vector<8x320xf32>
    %12 = arith.mulf %10, %11 : vector<8x320xf32>
    %13 = vector.broadcast %4 : vector<1x320xf32> to vector<8x320xf32>
    %14 = arith.addf %12, %13 : vector<8x320xf32>
    %15 = vector.extract_strided_slice %14 {offsets = [0, 0], sizes = [8, 32], strides = [1, 1]} : vector<8x320xf32> to vector<8x32xf32>
    %16 = vector.extract_strided_slice %14 {offsets = [0, 32], sizes = [8, 32], strides = [1, 1]} : vector<8x320xf32> to vector<8x32xf32>
    %17 = arith.maximumf %15, %16 : vector<8x32xf32>
    %18 = vector.extract_strided_slice %14 {offsets = [0, 64], sizes = [8, 32], strides = [1, 1]} : vector<8x320xf32> to vector<8x32xf32>
    %19 = arith.maximumf %17, %18 : vector<8x32xf32>
    %20 = vector.extract_strided_slice %14 {offsets = [0, 96], sizes = [8, 32], strides = [1, 1]} : vector<8x320xf32> to vector<8x32xf32>
    %21 = arith.maximumf %19, %20 : vector<8x32xf32>
    %22 = vector.extract_strided_slice %14 {offsets = [0, 128], sizes = [8, 32], strides = [1, 1]} : vector<8x320xf32> to vector<8x32xf32>
    %23 = arith.maximumf %21, %22 : vector<8x32xf32>
    %24 = vector.extract_strided_slice %14 {offsets = [0, 160], sizes = [8, 32], strides = [1, 1]} : vector<8x320xf32> to vector<8x32xf32>
    %25 = arith.maximumf %23, %24 : vector<8x32xf32>
    %26 = vector.extract_strided_slice %14 {offsets = [0, 192], sizes = [8, 32], strides = [1, 1]} : vector<8x320xf32> to vector<8x32xf32>
    %27 = arith.maximumf %25, %26 : vector<8x32xf32>
    %28 = vector.extract_strided_slice %14 {offsets = [0, 224], sizes = [8, 32], strides = [1, 1]} : vector<8x320xf32> to vector<8x32xf32>
    %29 = arith.maximumf %27, %28 : vector<8x32xf32>
    %30 = vector.extract_strided_slice %14 {offsets = [0, 256], sizes = [8, 32], strides = [1, 1]} : vector<8x320xf32> to vector<8x32xf32>
    %31 = arith.maximumf %29, %30 : vector<8x32xf32>
    %32 = vector.extract_strided_slice %14 {offsets = [0, 288], sizes = [8, 32], strides = [1, 1]} : vector<8x320xf32> to vector<8x32xf32>
    %33 = arith.maximumf %31, %32 : vector<8x32xf32>
    %c0_10 = arith.constant 0 : index
    %c0_11 = arith.constant 0 : index
    %c0_12 = arith.constant 0 : index
    %34 = vector.load %arg6[%c0_10, %c0_11, %c0_12] : memref<10x32x128xf32, #tpu.memory_space<vmem>>, vector<1x32x128xf32>
    %35 = vector.shape_cast %34 : vector<1x32x128xf32> to vector<32x128xf32>
    %cst_13 = arith.constant dense<0.000000e+00> : vector<8x128xf32>
    %36 = tpu.matmul %33, %35, %cst_13 {dimension_numbers = #tpu.dot_dimension_numbers<[1], [0], [0], [1], [0, 0, 1, 1], [], []>} : vector<8x32xf32>, vector<32x128xf32>, vector<8x128xf32> -> vector<8x128xf32>
    %37 = vector.extract_strided_slice %0 {offsets = [0, 10], sizes = [8, 112], strides = [1, 1]} : vector<8x256xf32> to vector<8x112xf32>
    %cst_14 = arith.constant dense<0.000000e+00> : vector<8x320xf32>
    %38 = tpu.matmul %37, %1, %cst_14 {dimension_numbers = #tpu.dot_dimension_numbers<[1], [0], [0], [1], [0, 0, 1, 1], [], []>} : vector<8x112xf32>, vector<112x320xf32>, vector<8x320xf32> -> vector<8x320xf32>
    %39 = vector.broadcast %2 : vector<1x320xf32> to vector<8x320xf32>
    %40 = arith.addf %38, %39 : vector<8x320xf32>
    %cst_15 = arith.constant 0.000000e+00 : f32
    %41 = vector.broadcast %cst_15 : f32 to vector<8x320xf32>
    %42 = arith.maximumf %40, %41 : vector<8x320xf32>
    %43 = vector.broadcast %3 : vector<1x320xf32> to vector<8x320xf32>
    %44 = arith.mulf %42, %43 : vector<8x320xf32>
    %45 = vector.broadcast %4 : vector<1x320xf32> to vector<8x320xf32>
    %46 = arith.addf %44, %45 : vector<8x320xf32>
    %47 = vector.extract_strided_slice %46 {offsets = [0, 0], sizes = [8, 32], strides = [1, 1]} : vector<8x320xf32> to vector<8x32xf32>
    %48 = vector.extract_strided_slice %46 {offsets = [0, 32], sizes = [8, 32], strides = [1, 1]} : vector<8x320xf32> to vector<8x32xf32>
    %49 = arith.maximumf %47, %48 : vector<8x32xf32>
    %50 = vector.extract_strided_slice %46 {offsets = [0, 64], sizes = [8, 32], strides = [1, 1]} : vector<8x320xf32> to vector<8x32xf32>
    %51 = arith.maximumf %49, %50 : vector<8x32xf32>
    %52 = vector.extract_strided_slice %46 {offsets = [0, 96], sizes = [8, 32], strides = [1, 1]} : vector<8x320xf32> to vector<8x32xf32>
    %53 = arith.maximumf %51, %52 : vector<8x32xf32>
    %54 = vector.extract_strided_slice %46 {offsets = [0, 128], sizes = [8, 32], strides = [1, 1]} : vector<8x320xf32> to vector<8x32xf32>
    %55 = arith.maximumf %53, %54 : vector<8x32xf32>
    %56 = vector.extract_strided_slice %46 {offsets = [0, 160], sizes = [8, 32], strides = [1, 1]} : vector<8x320xf32> to vector<8x32xf32>
    %57 = arith.maximumf %55, %56 : vector<8x32xf32>
    %58 = vector.extract_strided_slice %46 {offsets = [0, 192], sizes = [8, 32], strides = [1, 1]} : vector<8x320xf32> to vector<8x32xf32>
    %59 = arith.maximumf %57, %58 : vector<8x32xf32>
    %60 = vector.extract_strided_slice %46 {offsets = [0, 224], sizes = [8, 32], strides = [1, 1]} : vector<8x320xf32> to vector<8x32xf32>
    %61 = arith.maximumf %59, %60 : vector<8x32xf32>
    %62 = vector.extract_strided_slice %46 {offsets = [0, 256], sizes = [8, 32], strides = [1, 1]} : vector<8x320xf32> to vector<8x32xf32>
    %63 = arith.maximumf %61, %62 : vector<8x32xf32>
    %64 = vector.extract_strided_slice %46 {offsets = [0, 288], sizes = [8, 32], strides = [1, 1]} : vector<8x320xf32> to vector<8x32xf32>
    %65 = arith.maximumf %63, %64 : vector<8x32xf32>
    %c1 = arith.constant 1 : index
    %c0_16 = arith.constant 0 : index
    %c0_17 = arith.constant 0 : index
    %66 = vector.load %arg6[%c1, %c0_16, %c0_17] : memref<10x32x128xf32, #tpu.memory_space<vmem>>, vector<1x32x128xf32>
    %67 = vector.shape_cast %66 : vector<1x32x128xf32> to vector<32x128xf32>
    %cst_18 = arith.constant dense<0.000000e+00> : vector<8x128xf32>
    %68 = tpu.matmul %65, %67, %cst_18 {dimension_numbers = #tpu.dot_dimension_numbers<[1], [0], [0], [1], [0, 0, 1, 1], [], []>} : vector<8x32xf32>, vector<32x128xf32>, vector<8x128xf32> -> vector<8x128xf32>
    %69 = arith.addf %36, %68 : vector<8x128xf32>
    %70 = vector.extract_strided_slice %0 {offsets = [0, 20], sizes = [8, 112], strides = [1, 1]} : vector<8x256xf32> to vector<8x112xf32>
    %cst_19 = arith.constant dense<0.000000e+00> : vector<8x320xf32>
    %71 = tpu.matmul %70, %1, %cst_19 {dimension_numbers = #tpu.dot_dimension_numbers<[1], [0], [0], [1], [0, 0, 1, 1], [], []>} : vector<8x112xf32>, vector<112x320xf32>, vector<8x320xf32> -> vector<8x320xf32>
    %72 = vector.broadcast %2 : vector<1x320xf32> to vector<8x320xf32>
    %73 = arith.addf %71, %72 : vector<8x320xf32>
    %cst_20 = arith.constant 0.000000e+00 : f32
    %74 = vector.broadcast %cst_20 : f32 to vector<8x320xf32>
    %75 = arith.maximumf %73, %74 : vector<8x320xf32>
    %76 = vector.broadcast %3 : vector<1x320xf32> to vector<8x320xf32>
    %77 = arith.mulf %75, %76 : vector<8x320xf32>
    %78 = vector.broadcast %4 : vector<1x320xf32> to vector<8x320xf32>
    %79 = arith.addf %77, %78 : vector<8x320xf32>
    %80 = vector.extract_strided_slice %79 {offsets = [0, 0], sizes = [8, 32], strides = [1, 1]} : vector<8x320xf32> to vector<8x32xf32>
    %81 = vector.extract_strided_slice %79 {offsets = [0, 32], sizes = [8, 32], strides = [1, 1]} : vector<8x320xf32> to vector<8x32xf32>
    %82 = arith.maximumf %80, %81 : vector<8x32xf32>
    %83 = vector.extract_strided_slice %79 {offsets = [0, 64], sizes = [8, 32], strides = [1, 1]} : vector<8x320xf32> to vector<8x32xf32>
    %84 = arith.maximumf %82, %83 : vector<8x32xf32>
    %85 = vector.extract_strided_slice %79 {offsets = [0, 96], sizes = [8, 32], strides = [1, 1]} : vector<8x320xf32> to vector<8x32xf32>
    %86 = arith.maximumf %84, %85 : vector<8x32xf32>
    %87 = vector.extract_strided_slice %79 {offsets = [0, 128], sizes = [8, 32], strides = [1, 1]} : vector<8x320xf32> to vector<8x32xf32>
    %88 = arith.maximumf %86, %87 : vector<8x32xf32>
    %89 = vector.extract_strided_slice %79 {offsets = [0, 160], sizes = [8, 32], strides = [1, 1]} : vector<8x320xf32> to vector<8x32xf32>
    %90 = arith.maximumf %88, %89 : vector<8x32xf32>
    %91 = vector.extract_strided_slice %79 {offsets = [0, 192], sizes = [8, 32], strides = [1, 1]} : vector<8x320xf32> to vector<8x32xf32>
    %92 = arith.maximumf %90, %91 : vector<8x32xf32>
    %93 = vector.extract_strided_slice %79 {offsets = [0, 224], sizes = [8, 32], strides = [1, 1]} : vector<8x320xf32> to vector<8x32xf32>
    %94 = arith.maximumf %92, %93 : vector<8x32xf32>
    %95 = vector.extract_strided_slice %79 {offsets = [0, 256], sizes = [8, 32], strides = [1, 1]} : vector<8x320xf32> to vector<8x32xf32>
    %96 = arith.maximumf %94, %95 : vector<8x32xf32>
    %97 = vector.extract_strided_slice %79 {offsets = [0, 288], sizes = [8, 32], strides = [1, 1]} : vector<8x320xf32> to vector<8x32xf32>
    %98 = arith.maximumf %96, %97 : vector<8x32xf32>
    %c2 = arith.constant 2 : index
    %c0_21 = arith.constant 0 : index
    %c0_22 = arith.constant 0 : index
    %99 = vector.load %arg6[%c2, %c0_21, %c0_22] : memref<10x32x128xf32, #tpu.memory_space<vmem>>, vector<1x32x128xf32>
    %100 = vector.shape_cast %99 : vector<1x32x128xf32> to vector<32x128xf32>
    %cst_23 = arith.constant dense<0.000000e+00> : vector<8x128xf32>
    %101 = tpu.matmul %98, %100, %cst_23 {dimension_numbers = #tpu.dot_dimension_numbers<[1], [0], [0], [1], [0, 0, 1, 1], [], []>} : vector<8x32xf32>, vector<32x128xf32>, vector<8x128xf32> -> vector<8x128xf32>
    %102 = arith.addf %69, %101 : vector<8x128xf32>
    %103 = vector.extract_strided_slice %0 {offsets = [0, 30], sizes = [8, 112], strides = [1, 1]} : vector<8x256xf32> to vector<8x112xf32>
    %cst_24 = arith.constant dense<0.000000e+00> : vector<8x320xf32>
    %104 = tpu.matmul %103, %1, %cst_24 {dimension_numbers = #tpu.dot_dimension_numbers<[1], [0], [0], [1], [0, 0, 1, 1], [], []>} : vector<8x112xf32>, vector<112x320xf32>, vector<8x320xf32> -> vector<8x320xf32>
    %105 = vector.broadcast %2 : vector<1x320xf32> to vector<8x320xf32>
    %106 = arith.addf %104, %105 : vector<8x320xf32>
    %cst_25 = arith.constant 0.000000e+00 : f32
    %107 = vector.broadcast %cst_25 : f32 to vector<8x320xf32>
    %108 = arith.maximumf %106, %107 : vector<8x320xf32>
    %109 = vector.broadcast %3 : vector<1x320xf32> to vector<8x320xf32>
    %110 = arith.mulf %108, %109 : vector<8x320xf32>
    %111 = vector.broadcast %4 : vector<1x320xf32> to vector<8x320xf32>
    %112 = arith.addf %110, %111 : vector<8x320xf32>
    %113 = vector.extract_strided_slice %112 {offsets = [0, 0], sizes = [8, 32], strides = [1, 1]} : vector<8x320xf32> to vector<8x32xf32>
    %114 = vector.extract_strided_slice %112 {offsets = [0, 32], sizes = [8, 32], strides = [1, 1]} : vector<8x320xf32> to vector<8x32xf32>
    %115 = arith.maximumf %113, %114 : vector<8x32xf32>
    %116 = vector.extract_strided_slice %112 {offsets = [0, 64], sizes = [8, 32], strides = [1, 1]} : vector<8x320xf32> to vector<8x32xf32>
    %117 = arith.maximumf %115, %116 : vector<8x32xf32>
    %118 = vector.extract_strided_slice %112 {offsets = [0, 96], sizes = [8, 32], strides = [1, 1]} : vector<8x320xf32> to vector<8x32xf32>
    %119 = arith.maximumf %117, %118 : vector<8x32xf32>
    %120 = vector.extract_strided_slice %112 {offsets = [0, 128], sizes = [8, 32], strides = [1, 1]} : vector<8x320xf32> to vector<8x32xf32>
    %121 = arith.maximumf %119, %120 : vector<8x32xf32>
    %122 = vector.extract_strided_slice %112 {offsets = [0, 160], sizes = [8, 32], strides = [1, 1]} : vector<8x320xf32> to vector<8x32xf32>
    %123 = arith.maximumf %121, %122 : vector<8x32xf32>
    %124 = vector.extract_strided_slice %112 {offsets = [0, 192], sizes = [8, 32], strides = [1, 1]} : vector<8x320xf32> to vector<8x32xf32>
    %125 = arith.maximumf %123, %124 : vector<8x32xf32>
    %126 = vector.extract_strided_slice %112 {offsets = [0, 224], sizes = [8, 32], strides = [1, 1]} : vector<8x320xf32> to vector<8x32xf32>
    %127 = arith.maximumf %125, %126 : vector<8x32xf32>
    %128 = vector.extract_strided_slice %112 {offsets = [0, 256], sizes = [8, 32], strides = [1, 1]} : vector<8x320xf32> to vector<8x32xf32>
    %129 = arith.maximumf %127, %128 : vector<8x32xf32>
    %130 = vector.extract_strided_slice %112 {offsets = [0, 288], sizes = [8, 32], strides = [1, 1]} : vector<8x320xf32> to vector<8x32xf32>
    %131 = arith.maximumf %129, %130 : vector<8x32xf32>
    %c3 = arith.constant 3 : index
    %c0_26 = arith.constant 0 : index
    %c0_27 = arith.constant 0 : index
    %132 = vector.load %arg6[%c3, %c0_26, %c0_27] : memref<10x32x128xf32, #tpu.memory_space<vmem>>, vector<1x32x128xf32>
    %133 = vector.shape_cast %132 : vector<1x32x128xf32> to vector<32x128xf32>
    %cst_28 = arith.constant dense<0.000000e+00> : vector<8x128xf32>
    %134 = tpu.matmul %131, %133, %cst_28 {dimension_numbers = #tpu.dot_dimension_numbers<[1], [0], [0], [1], [0, 0, 1, 1], [], []>} : vector<8x32xf32>, vector<32x128xf32>, vector<8x128xf32> -> vector<8x128xf32>
    %135 = arith.addf %102, %134 : vector<8x128xf32>
    %136 = vector.extract_strided_slice %0 {offsets = [0, 40], sizes = [8, 112], strides = [1, 1]} : vector<8x256xf32> to vector<8x112xf32>
    %cst_29 = arith.constant dense<0.000000e+00> : vector<8x320xf32>
    %137 = tpu.matmul %136, %1, %cst_29 {dimension_numbers = #tpu.dot_dimension_numbers<[1], [0], [0], [1], [0, 0, 1, 1], [], []>} : vector<8x112xf32>, vector<112x320xf32>, vector<8x320xf32> -> vector<8x320xf32>
    %138 = vector.broadcast %2 : vector<1x320xf32> to vector<8x320xf32>
    %139 = arith.addf %137, %138 : vector<8x320xf32>
    %cst_30 = arith.constant 0.000000e+00 : f32
    %140 = vector.broadcast %cst_30 : f32 to vector<8x320xf32>
    %141 = arith.maximumf %139, %140 : vector<8x320xf32>
    %142 = vector.broadcast %3 : vector<1x320xf32> to vector<8x320xf32>
    %143 = arith.mulf %141, %142 : vector<8x320xf32>
    %144 = vector.broadcast %4 : vector<1x320xf32> to vector<8x320xf32>
    %145 = arith.addf %143, %144 : vector<8x320xf32>
    %146 = vector.extract_strided_slice %145 {offsets = [0, 0], sizes = [8, 32], strides = [1, 1]} : vector<8x320xf32> to vector<8x32xf32>
    %147 = vector.extract_strided_slice %145 {offsets = [0, 32], sizes = [8, 32], strides = [1, 1]} : vector<8x320xf32> to vector<8x32xf32>
    %148 = arith.maximumf %146, %147 : vector<8x32xf32>
    %149 = vector.extract_strided_slice %145 {offsets = [0, 64], sizes = [8, 32], strides = [1, 1]} : vector<8x320xf32> to vector<8x32xf32>
    %150 = arith.maximumf %148, %149 : vector<8x32xf32>
    %151 = vector.extract_strided_slice %145 {offsets = [0, 96], sizes = [8, 32], strides = [1, 1]} : vector<8x320xf32> to vector<8x32xf32>
    %152 = arith.maximumf %150, %151 : vector<8x32xf32>
    %153 = vector.extract_strided_slice %145 {offsets = [0, 128], sizes = [8, 32], strides = [1, 1]} : vector<8x320xf32> to vector<8x32xf32>
    %154 = arith.maximumf %152, %153 : vector<8x32xf32>
    %155 = vector.extract_strided_slice %145 {offsets = [0, 160], sizes = [8, 32], strides = [1, 1]} : vector<8x320xf32> to vector<8x32xf32>
    %156 = arith.maximumf %154, %155 : vector<8x32xf32>
    %157 = vector.extract_strided_slice %145 {offsets = [0, 192], sizes = [8, 32], strides = [1, 1]} : vector<8x320xf32> to vector<8x32xf32>
    %158 = arith.maximumf %156, %157 : vector<8x32xf32>
    %159 = vector.extract_strided_slice %145 {offsets = [0, 224], sizes = [8, 32], strides = [1, 1]} : vector<8x320xf32> to vector<8x32xf32>
    %160 = arith.maximumf %158, %159 : vector<8x32xf32>
    %161 = vector.extract_strided_slice %145 {offsets = [0, 256], sizes = [8, 32], strides = [1, 1]} : vector<8x320xf32> to vector<8x32xf32>
    %162 = arith.maximumf %160, %161 : vector<8x32xf32>
    %163 = vector.extract_strided_slice %145 {offsets = [0, 288], sizes = [8, 32], strides = [1, 1]} : vector<8x320xf32> to vector<8x32xf32>
    %164 = arith.maximumf %162, %163 : vector<8x32xf32>
    %c4 = arith.constant 4 : index
    %c0_31 = arith.constant 0 : index
    %c0_32 = arith.constant 0 : index
    %165 = vector.load %arg6[%c4, %c0_31, %c0_32] : memref<10x32x128xf32, #tpu.memory_space<vmem>>, vector<1x32x128xf32>
    %166 = vector.shape_cast %165 : vector<1x32x128xf32> to vector<32x128xf32>
    %cst_33 = arith.constant dense<0.000000e+00> : vector<8x128xf32>
    %167 = tpu.matmul %164, %166, %cst_33 {dimension_numbers = #tpu.dot_dimension_numbers<[1], [0], [0], [1], [0, 0, 1, 1], [], []>} : vector<8x32xf32>, vector<32x128xf32>, vector<8x128xf32> -> vector<8x128xf32>
    %168 = arith.addf %135, %167 : vector<8x128xf32>
    %169 = vector.extract_strided_slice %0 {offsets = [0, 50], sizes = [8, 112], strides = [1, 1]} : vector<8x256xf32> to vector<8x112xf32>
    %cst_34 = arith.constant dense<0.000000e+00> : vector<8x320xf32>
    %170 = tpu.matmul %169, %1, %cst_34 {dimension_numbers = #tpu.dot_dimension_numbers<[1], [0], [0], [1], [0, 0, 1, 1], [], []>} : vector<8x112xf32>, vector<112x320xf32>, vector<8x320xf32> -> vector<8x320xf32>
    %171 = vector.broadcast %2 : vector<1x320xf32> to vector<8x320xf32>
    %172 = arith.addf %170, %171 : vector<8x320xf32>
    %cst_35 = arith.constant 0.000000e+00 : f32
    %173 = vector.broadcast %cst_35 : f32 to vector<8x320xf32>
    %174 = arith.maximumf %172, %173 : vector<8x320xf32>
    %175 = vector.broadcast %3 : vector<1x320xf32> to vector<8x320xf32>
    %176 = arith.mulf %174, %175 : vector<8x320xf32>
    %177 = vector.broadcast %4 : vector<1x320xf32> to vector<8x320xf32>
    %178 = arith.addf %176, %177 : vector<8x320xf32>
    %179 = vector.extract_strided_slice %178 {offsets = [0, 0], sizes = [8, 32], strides = [1, 1]} : vector<8x320xf32> to vector<8x32xf32>
    %180 = vector.extract_strided_slice %178 {offsets = [0, 32], sizes = [8, 32], strides = [1, 1]} : vector<8x320xf32> to vector<8x32xf32>
    %181 = arith.maximumf %179, %180 : vector<8x32xf32>
    %182 = vector.extract_strided_slice %178 {offsets = [0, 64], sizes = [8, 32], strides = [1, 1]} : vector<8x320xf32> to vector<8x32xf32>
    %183 = arith.maximumf %181, %182 : vector<8x32xf32>
    %184 = vector.extract_strided_slice %178 {offsets = [0, 96], sizes = [8, 32], strides = [1, 1]} : vector<8x320xf32> to vector<8x32xf32>
    %185 = arith.maximumf %183, %184 : vector<8x32xf32>
    %186 = vector.extract_strided_slice %178 {offsets = [0, 128], sizes = [8, 32], strides = [1, 1]} : vector<8x320xf32> to vector<8x32xf32>
    %187 = arith.maximumf %185, %186 : vector<8x32xf32>
    %188 = vector.extract_strided_slice %178 {offsets = [0, 160], sizes = [8, 32], strides = [1, 1]} : vector<8x320xf32> to vector<8x32xf32>
    %189 = arith.maximumf %187, %188 : vector<8x32xf32>
    %190 = vector.extract_strided_slice %178 {offsets = [0, 192], sizes = [8, 32], strides = [1, 1]} : vector<8x320xf32> to vector<8x32xf32>
    %191 = arith.maximumf %189, %190 : vector<8x32xf32>
    %192 = vector.extract_strided_slice %178 {offsets = [0, 224], sizes = [8, 32], strides = [1, 1]} : vector<8x320xf32> to vector<8x32xf32>
    %193 = arith.maximumf %191, %192 : vector<8x32xf32>
    %194 = vector.extract_strided_slice %178 {offsets = [0, 256], sizes = [8, 32], strides = [1, 1]} : vector<8x320xf32> to vector<8x32xf32>
    %195 = arith.maximumf %193, %194 : vector<8x32xf32>
    %196 = vector.extract_strided_slice %178 {offsets = [0, 288], sizes = [8, 32], strides = [1, 1]} : vector<8x320xf32> to vector<8x32xf32>
    %197 = arith.maximumf %195, %196 : vector<8x32xf32>
    %c5 = arith.constant 5 : index
    %c0_36 = arith.constant 0 : index
    %c0_37 = arith.constant 0 : index
    %198 = vector.load %arg6[%c5, %c0_36, %c0_37] : memref<10x32x128xf32, #tpu.memory_space<vmem>>, vector<1x32x128xf32>
    %199 = vector.shape_cast %198 : vector<1x32x128xf32> to vector<32x128xf32>
    %cst_38 = arith.constant dense<0.000000e+00> : vector<8x128xf32>
    %200 = tpu.matmul %197, %199, %cst_38 {dimension_numbers = #tpu.dot_dimension_numbers<[1], [0], [0], [1], [0, 0, 1, 1], [], []>} : vector<8x32xf32>, vector<32x128xf32>, vector<8x128xf32> -> vector<8x128xf32>
    %201 = arith.addf %168, %200 : vector<8x128xf32>
    %202 = vector.extract_strided_slice %0 {offsets = [0, 60], sizes = [8, 112], strides = [1, 1]} : vector<8x256xf32> to vector<8x112xf32>
    %cst_39 = arith.constant dense<0.000000e+00> : vector<8x320xf32>
    %203 = tpu.matmul %202, %1, %cst_39 {dimension_numbers = #tpu.dot_dimension_numbers<[1], [0], [0], [1], [0, 0, 1, 1], [], []>} : vector<8x112xf32>, vector<112x320xf32>, vector<8x320xf32> -> vector<8x320xf32>
    %204 = vector.broadcast %2 : vector<1x320xf32> to vector<8x320xf32>
    %205 = arith.addf %203, %204 : vector<8x320xf32>
    %cst_40 = arith.constant 0.000000e+00 : f32
    %206 = vector.broadcast %cst_40 : f32 to vector<8x320xf32>
    %207 = arith.maximumf %205, %206 : vector<8x320xf32>
    %208 = vector.broadcast %3 : vector<1x320xf32> to vector<8x320xf32>
    %209 = arith.mulf %207, %208 : vector<8x320xf32>
    %210 = vector.broadcast %4 : vector<1x320xf32> to vector<8x320xf32>
    %211 = arith.addf %209, %210 : vector<8x320xf32>
    %212 = vector.extract_strided_slice %211 {offsets = [0, 0], sizes = [8, 32], strides = [1, 1]} : vector<8x320xf32> to vector<8x32xf32>
    %213 = vector.extract_strided_slice %211 {offsets = [0, 32], sizes = [8, 32], strides = [1, 1]} : vector<8x320xf32> to vector<8x32xf32>
    %214 = arith.maximumf %212, %213 : vector<8x32xf32>
    %215 = vector.extract_strided_slice %211 {offsets = [0, 64], sizes = [8, 32], strides = [1, 1]} : vector<8x320xf32> to vector<8x32xf32>
    %216 = arith.maximumf %214, %215 : vector<8x32xf32>
    %217 = vector.extract_strided_slice %211 {offsets = [0, 96], sizes = [8, 32], strides = [1, 1]} : vector<8x320xf32> to vector<8x32xf32>
    %218 = arith.maximumf %216, %217 : vector<8x32xf32>
    %219 = vector.extract_strided_slice %211 {offsets = [0, 128], sizes = [8, 32], strides = [1, 1]} : vector<8x320xf32> to vector<8x32xf32>
    %220 = arith.maximumf %218, %219 : vector<8x32xf32>
    %221 = vector.extract_strided_slice %211 {offsets = [0, 160], sizes = [8, 32], strides = [1, 1]} : vector<8x320xf32> to vector<8x32xf32>
    %222 = arith.maximumf %220, %221 : vector<8x32xf32>
    %223 = vector.extract_strided_slice %211 {offsets = [0, 192], sizes = [8, 32], strides = [1, 1]} : vector<8x320xf32> to vector<8x32xf32>
    %224 = arith.maximumf %222, %223 : vector<8x32xf32>
    %225 = vector.extract_strided_slice %211 {offsets = [0, 224], sizes = [8, 32], strides = [1, 1]} : vector<8x320xf32> to vector<8x32xf32>
    %226 = arith.maximumf %224, %225 : vector<8x32xf32>
    %227 = vector.extract_strided_slice %211 {offsets = [0, 256], sizes = [8, 32], strides = [1, 1]} : vector<8x320xf32> to vector<8x32xf32>
    %228 = arith.maximumf %226, %227 : vector<8x32xf32>
    %229 = vector.extract_strided_slice %211 {offsets = [0, 288], sizes = [8, 32], strides = [1, 1]} : vector<8x320xf32> to vector<8x32xf32>
    %230 = arith.maximumf %228, %229 : vector<8x32xf32>
    %c6 = arith.constant 6 : index
    %c0_41 = arith.constant 0 : index
    %c0_42 = arith.constant 0 : index
    %231 = vector.load %arg6[%c6, %c0_41, %c0_42] : memref<10x32x128xf32, #tpu.memory_space<vmem>>, vector<1x32x128xf32>
    %232 = vector.shape_cast %231 : vector<1x32x128xf32> to vector<32x128xf32>
    %cst_43 = arith.constant dense<0.000000e+00> : vector<8x128xf32>
    %233 = tpu.matmul %230, %232, %cst_43 {dimension_numbers = #tpu.dot_dimension_numbers<[1], [0], [0], [1], [0, 0, 1, 1], [], []>} : vector<8x32xf32>, vector<32x128xf32>, vector<8x128xf32> -> vector<8x128xf32>
    %234 = arith.addf %201, %233 : vector<8x128xf32>
    %235 = vector.extract_strided_slice %0 {offsets = [0, 70], sizes = [8, 112], strides = [1, 1]} : vector<8x256xf32> to vector<8x112xf32>
    %cst_44 = arith.constant dense<0.000000e+00> : vector<8x320xf32>
    %236 = tpu.matmul %235, %1, %cst_44 {dimension_numbers = #tpu.dot_dimension_numbers<[1], [0], [0], [1], [0, 0, 1, 1], [], []>} : vector<8x112xf32>, vector<112x320xf32>, vector<8x320xf32> -> vector<8x320xf32>
    %237 = vector.broadcast %2 : vector<1x320xf32> to vector<8x320xf32>
    %238 = arith.addf %236, %237 : vector<8x320xf32>
    %cst_45 = arith.constant 0.000000e+00 : f32
    %239 = vector.broadcast %cst_45 : f32 to vector<8x320xf32>
    %240 = arith.maximumf %238, %239 : vector<8x320xf32>
    %241 = vector.broadcast %3 : vector<1x320xf32> to vector<8x320xf32>
    %242 = arith.mulf %240, %241 : vector<8x320xf32>
    %243 = vector.broadcast %4 : vector<1x320xf32> to vector<8x320xf32>
    %244 = arith.addf %242, %243 : vector<8x320xf32>
    %245 = vector.extract_strided_slice %244 {offsets = [0, 0], sizes = [8, 32], strides = [1, 1]} : vector<8x320xf32> to vector<8x32xf32>
    %246 = vector.extract_strided_slice %244 {offsets = [0, 32], sizes = [8, 32], strides = [1, 1]} : vector<8x320xf32> to vector<8x32xf32>
    %247 = arith.maximumf %245, %246 : vector<8x32xf32>
    %248 = vector.extract_strided_slice %244 {offsets = [0, 64], sizes = [8, 32], strides = [1, 1]} : vector<8x320xf32> to vector<8x32xf32>
    %249 = arith.maximumf %247, %248 : vector<8x32xf32>
    %250 = vector.extract_strided_slice %244 {offsets = [0, 96], sizes = [8, 32], strides = [1, 1]} : vector<8x320xf32> to vector<8x32xf32>
    %251 = arith.maximumf %249, %250 : vector<8x32xf32>
    %252 = vector.extract_strided_slice %244 {offsets = [0, 128], sizes = [8, 32], strides = [1, 1]} : vector<8x320xf32> to vector<8x32xf32>
    %253 = arith.maximumf %251, %252 : vector<8x32xf32>
    %254 = vector.extract_strided_slice %244 {offsets = [0, 160], sizes = [8, 32], strides = [1, 1]} : vector<8x320xf32> to vector<8x32xf32>
    %255 = arith.maximumf %253, %254 : vector<8x32xf32>
    %256 = vector.extract_strided_slice %244 {offsets = [0, 192], sizes = [8, 32], strides = [1, 1]} : vector<8x320xf32> to vector<8x32xf32>
    %257 = arith.maximumf %255, %256 : vector<8x32xf32>
    %258 = vector.extract_strided_slice %244 {offsets = [0, 224], sizes = [8, 32], strides = [1, 1]} : vector<8x320xf32> to vector<8x32xf32>
    %259 = arith.maximumf %257, %258 : vector<8x32xf32>
    %260 = vector.extract_strided_slice %244 {offsets = [0, 256], sizes = [8, 32], strides = [1, 1]} : vector<8x320xf32> to vector<8x32xf32>
    %261 = arith.maximumf %259, %260 : vector<8x32xf32>
    %262 = vector.extract_strided_slice %244 {offsets = [0, 288], sizes = [8, 32], strides = [1, 1]} : vector<8x320xf32> to vector<8x32xf32>
    %263 = arith.maximumf %261, %262 : vector<8x32xf32>
    %c7 = arith.constant 7 : index
    %c0_46 = arith.constant 0 : index
    %c0_47 = arith.constant 0 : index
    %264 = vector.load %arg6[%c7, %c0_46, %c0_47] : memref<10x32x128xf32, #tpu.memory_space<vmem>>, vector<1x32x128xf32>
    %265 = vector.shape_cast %264 : vector<1x32x128xf32> to vector<32x128xf32>
    %cst_48 = arith.constant dense<0.000000e+00> : vector<8x128xf32>
    %266 = tpu.matmul %263, %265, %cst_48 {dimension_numbers = #tpu.dot_dimension_numbers<[1], [0], [0], [1], [0, 0, 1, 1], [], []>} : vector<8x32xf32>, vector<32x128xf32>, vector<8x128xf32> -> vector<8x128xf32>
    %267 = arith.addf %234, %266 : vector<8x128xf32>
    %268 = vector.extract_strided_slice %0 {offsets = [0, 80], sizes = [8, 112], strides = [1, 1]} : vector<8x256xf32> to vector<8x112xf32>
    %cst_49 = arith.constant dense<0.000000e+00> : vector<8x320xf32>
    %269 = tpu.matmul %268, %1, %cst_49 {dimension_numbers = #tpu.dot_dimension_numbers<[1], [0], [0], [1], [0, 0, 1, 1], [], []>} : vector<8x112xf32>, vector<112x320xf32>, vector<8x320xf32> -> vector<8x320xf32>
    %270 = vector.broadcast %2 : vector<1x320xf32> to vector<8x320xf32>
    %271 = arith.addf %269, %270 : vector<8x320xf32>
    %cst_50 = arith.constant 0.000000e+00 : f32
    %272 = vector.broadcast %cst_50 : f32 to vector<8x320xf32>
    %273 = arith.maximumf %271, %272 : vector<8x320xf32>
    %274 = vector.broadcast %3 : vector<1x320xf32> to vector<8x320xf32>
    %275 = arith.mulf %273, %274 : vector<8x320xf32>
    %276 = vector.broadcast %4 : vector<1x320xf32> to vector<8x320xf32>
    %277 = arith.addf %275, %276 : vector<8x320xf32>
    %278 = vector.extract_strided_slice %277 {offsets = [0, 0], sizes = [8, 32], strides = [1, 1]} : vector<8x320xf32> to vector<8x32xf32>
    %279 = vector.extract_strided_slice %277 {offsets = [0, 32], sizes = [8, 32], strides = [1, 1]} : vector<8x320xf32> to vector<8x32xf32>
    %280 = arith.maximumf %278, %279 : vector<8x32xf32>
    %281 = vector.extract_strided_slice %277 {offsets = [0, 64], sizes = [8, 32], strides = [1, 1]} : vector<8x320xf32> to vector<8x32xf32>
    %282 = arith.maximumf %280, %281 : vector<8x32xf32>
    %283 = vector.extract_strided_slice %277 {offsets = [0, 96], sizes = [8, 32], strides = [1, 1]} : vector<8x320xf32> to vector<8x32xf32>
    %284 = arith.maximumf %282, %283 : vector<8x32xf32>
    %285 = vector.extract_strided_slice %277 {offsets = [0, 128], sizes = [8, 32], strides = [1, 1]} : vector<8x320xf32> to vector<8x32xf32>
    %286 = arith.maximumf %284, %285 : vector<8x32xf32>
    %287 = vector.extract_strided_slice %277 {offsets = [0, 160], sizes = [8, 32], strides = [1, 1]} : vector<8x320xf32> to vector<8x32xf32>
    %288 = arith.maximumf %286, %287 : vector<8x32xf32>
    %289 = vector.extract_strided_slice %277 {offsets = [0, 192], sizes = [8, 32], strides = [1, 1]} : vector<8x320xf32> to vector<8x32xf32>
    %290 = arith.maximumf %288, %289 : vector<8x32xf32>
    %291 = vector.extract_strided_slice %277 {offsets = [0, 224], sizes = [8, 32], strides = [1, 1]} : vector<8x320xf32> to vector<8x32xf32>
    %292 = arith.maximumf %290, %291 : vector<8x32xf32>
    %293 = vector.extract_strided_slice %277 {offsets = [0, 256], sizes = [8, 32], strides = [1, 1]} : vector<8x320xf32> to vector<8x32xf32>
    %294 = arith.maximumf %292, %293 : vector<8x32xf32>
    %295 = vector.extract_strided_slice %277 {offsets = [0, 288], sizes = [8, 32], strides = [1, 1]} : vector<8x320xf32> to vector<8x32xf32>
    %296 = arith.maximumf %294, %295 : vector<8x32xf32>
    %c8 = arith.constant 8 : index
    %c0_51 = arith.constant 0 : index
    %c0_52 = arith.constant 0 : index
    %297 = vector.load %arg6[%c8, %c0_51, %c0_52] : memref<10x32x128xf32, #tpu.memory_space<vmem>>, vector<1x32x128xf32>
    %298 = vector.shape_cast %297 : vector<1x32x128xf32> to vector<32x128xf32>
    %cst_53 = arith.constant dense<0.000000e+00> : vector<8x128xf32>
    %299 = tpu.matmul %296, %298, %cst_53 {dimension_numbers = #tpu.dot_dimension_numbers<[1], [0], [0], [1], [0, 0, 1, 1], [], []>} : vector<8x32xf32>, vector<32x128xf32>, vector<8x128xf32> -> vector<8x128xf32>
    %300 = arith.addf %267, %299 : vector<8x128xf32>
    %301 = vector.extract_strided_slice %0 {offsets = [0, 90], sizes = [8, 112], strides = [1, 1]} : vector<8x256xf32> to vector<8x112xf32>
    %cst_54 = arith.constant dense<0.000000e+00> : vector<8x320xf32>
    %302 = tpu.matmul %301, %1, %cst_54 {dimension_numbers = #tpu.dot_dimension_numbers<[1], [0], [0], [1], [0, 0, 1, 1], [], []>} : vector<8x112xf32>, vector<112x320xf32>, vector<8x320xf32> -> vector<8x320xf32>
    %303 = vector.broadcast %2 : vector<1x320xf32> to vector<8x320xf32>
    %304 = arith.addf %302, %303 : vector<8x320xf32>
    %cst_55 = arith.constant 0.000000e+00 : f32
    %305 = vector.broadcast %cst_55 : f32 to vector<8x320xf32>
    %306 = arith.maximumf %304, %305 : vector<8x320xf32>
    %307 = vector.broadcast %3 : vector<1x320xf32> to vector<8x320xf32>
    %308 = arith.mulf %306, %307 : vector<8x320xf32>
    %309 = vector.broadcast %4 : vector<1x320xf32> to vector<8x320xf32>
    %310 = arith.addf %308, %309 : vector<8x320xf32>
    %311 = vector.extract_strided_slice %310 {offsets = [0, 0], sizes = [8, 32], strides = [1, 1]} : vector<8x320xf32> to vector<8x32xf32>
    %312 = vector.extract_strided_slice %310 {offsets = [0, 32], sizes = [8, 32], strides = [1, 1]} : vector<8x320xf32> to vector<8x32xf32>
    %313 = arith.maximumf %311, %312 : vector<8x32xf32>
    %314 = vector.extract_strided_slice %310 {offsets = [0, 64], sizes = [8, 32], strides = [1, 1]} : vector<8x320xf32> to vector<8x32xf32>
    %315 = arith.maximumf %313, %314 : vector<8x32xf32>
    %316 = vector.extract_strided_slice %310 {offsets = [0, 96], sizes = [8, 32], strides = [1, 1]} : vector<8x320xf32> to vector<8x32xf32>
    %317 = arith.maximumf %315, %316 : vector<8x32xf32>
    %318 = vector.extract_strided_slice %310 {offsets = [0, 128], sizes = [8, 32], strides = [1, 1]} : vector<8x320xf32> to vector<8x32xf32>
    %319 = arith.maximumf %317, %318 : vector<8x32xf32>
    %320 = vector.extract_strided_slice %310 {offsets = [0, 160], sizes = [8, 32], strides = [1, 1]} : vector<8x320xf32> to vector<8x32xf32>
    %321 = arith.maximumf %319, %320 : vector<8x32xf32>
    %322 = vector.extract_strided_slice %310 {offsets = [0, 192], sizes = [8, 32], strides = [1, 1]} : vector<8x320xf32> to vector<8x32xf32>
    %323 = arith.maximumf %321, %322 : vector<8x32xf32>
    %324 = vector.extract_strided_slice %310 {offsets = [0, 224], sizes = [8, 32], strides = [1, 1]} : vector<8x320xf32> to vector<8x32xf32>
    %325 = arith.maximumf %323, %324 : vector<8x32xf32>
    %326 = vector.extract_strided_slice %310 {offsets = [0, 256], sizes = [8, 32], strides = [1, 1]} : vector<8x320xf32> to vector<8x32xf32>
    %327 = arith.maximumf %325, %326 : vector<8x32xf32>
    %328 = vector.extract_strided_slice %310 {offsets = [0, 288], sizes = [8, 32], strides = [1, 1]} : vector<8x320xf32> to vector<8x32xf32>
    %329 = arith.maximumf %327, %328 : vector<8x32xf32>
    %c9 = arith.constant 9 : index
    %c0_56 = arith.constant 0 : index
    %c0_57 = arith.constant 0 : index
    %330 = vector.load %arg6[%c9, %c0_56, %c0_57] : memref<10x32x128xf32, #tpu.memory_space<vmem>>, vector<1x32x128xf32>
    %331 = vector.shape_cast %330 : vector<1x32x128xf32> to vector<32x128xf32>
    %cst_58 = arith.constant dense<0.000000e+00> : vector<8x128xf32>
    %332 = tpu.matmul %329, %331, %cst_58 {dimension_numbers = #tpu.dot_dimension_numbers<[1], [0], [0], [1], [0, 0, 1, 1], [], []>} : vector<8x32xf32>, vector<32x128xf32>, vector<8x128xf32> -> vector<8x128xf32>
    %333 = arith.addf %300, %332 : vector<8x128xf32>
    %c0_59 = arith.constant 0 : index
    %c0_60 = arith.constant 0 : index
    %334 = vector.load %arg7[%c0_59, %c0_60] : memref<1x128xf32, #tpu.memory_space<vmem>>, vector<1x128xf32>
    %335 = vector.broadcast %334 : vector<1x128xf32> to vector<8x128xf32>
    %336 = arith.addf %333, %335 : vector<8x128xf32>
    %cst_61 = arith.constant 0.000000e+00 : f32
    %337 = vector.broadcast %cst_61 : f32 to vector<8x128xf32>
    %338 = arith.maximumf %336, %337 : vector<8x128xf32>
    %c0_62 = arith.constant 0 : index
    %c0_63 = arith.constant 0 : index
    %339 = vector.load %arg8[%c0_62, %c0_63] : memref<128x64xf32, #tpu.memory_space<vmem>>, vector<128x64xf32>
    %cst_64 = arith.constant dense<0.000000e+00> : vector<8x64xf32>
    %340 = tpu.matmul %338, %339, %cst_64 {dimension_numbers = #tpu.dot_dimension_numbers<[1], [0], [0], [1], [0, 0, 1, 1], [], []>} : vector<8x128xf32>, vector<128x64xf32>, vector<8x64xf32> -> vector<8x64xf32>
    %c0_65 = arith.constant 0 : index
    %c0_66 = arith.constant 0 : index
    %341 = vector.load %arg9[%c0_65, %c0_66] : memref<1x64xf32, #tpu.memory_space<vmem>>, vector<1x64xf32>
    %342 = vector.broadcast %341 : vector<1x64xf32> to vector<8x64xf32>
    %343 = arith.addf %340, %342 : vector<8x64xf32>
    %cst_67 = arith.constant 0.000000e+00 : f32
    %344 = vector.broadcast %cst_67 : f32 to vector<8x64xf32>
    %345 = arith.maximumf %343, %344 : vector<8x64xf32>
    %c0_68 = arith.constant 0 : index
    %c0_69 = arith.constant 0 : index
    %346 = vector.load %arg10[%c0_68, %c0_69] : memref<64x32xf32, #tpu.memory_space<vmem>>, vector<64x32xf32>
    %cst_70 = arith.constant dense<0.000000e+00> : vector<8x32xf32>
    %347 = tpu.matmul %345, %346, %cst_70 {dimension_numbers = #tpu.dot_dimension_numbers<[1], [0], [0], [1], [0, 0, 1, 1], [], []>} : vector<8x64xf32>, vector<64x32xf32>, vector<8x32xf32> -> vector<8x32xf32>
    %c0_71 = arith.constant 0 : index
    %c0_72 = arith.constant 0 : index
    %348 = vector.load %arg11[%c0_71, %c0_72] : memref<1x32xf32, #tpu.memory_space<vmem>>, vector<1x32xf32>
    %349 = vector.broadcast %348 : vector<1x32xf32> to vector<8x32xf32>
    %350 = arith.addf %347, %349 : vector<8x32xf32>
    %cst_73 = arith.constant 0.000000e+00 : f32
    %351 = vector.broadcast %cst_73 : f32 to vector<8x32xf32>
    %352 = arith.maximumf %350, %351 : vector<8x32xf32>
    %c0_74 = arith.constant 0 : index
    %c0_75 = arith.constant 0 : index
    %353 = vector.load %arg12[%c0_74, %c0_75] : memref<32x128xf32, #tpu.memory_space<vmem>>, vector<32x128xf32>
    %cst_76 = arith.constant dense<0.000000e+00> : vector<8x128xf32>
    %354 = tpu.matmul %352, %353, %cst_76 {dimension_numbers = #tpu.dot_dimension_numbers<[1], [0], [0], [1], [0, 0, 1, 1], [], []>} : vector<8x32xf32>, vector<32x128xf32>, vector<8x128xf32> -> vector<8x128xf32>
    %c0_77 = arith.constant 0 : index
    %c0_78 = arith.constant 0 : index
    %355 = vector.load %arg13[%c0_77, %c0_78] : memref<1x128xf32, #tpu.memory_space<vmem>>, vector<1x128xf32>
    %356 = vector.broadcast %355 : vector<1x128xf32> to vector<8x128xf32>
    %357 = arith.addf %354, %356 : vector<8x128xf32>
    %c0_79 = arith.constant 0 : index
    %c0_80 = arith.constant 0 : index
    %358 = vector.load %arg14[%c0_79, %c0_80] : memref<8x128xf32, #tpu.memory_space<vmem>>, vector<8x128xf32>
    tpu.vector_store %arg14[%c0_79, %c0_80], %357 {strides = array<i32>} : memref<8x128xf32, #tpu.memory_space<vmem>>, vector<8x128xf32>,
    return
  }
  func.func @transform_0(%arg0: i32) -> (i32, i32) {
    %c0_i32 = arith.constant 0 : i32
    %c0_i32_0 = arith.constant 0 : i32
    return %arg0, %c0_i32 : i32, i32
  }
  func.func @transform_1(%arg0: i32) -> (i32, i32) {
    %c0_i32 = arith.constant 0 : i32
    %c0_i32_0 = arith.constant 0 : i32
    %c0_i32_1 = arith.constant 0 : i32
    return %c0_i32, %c0_i32_0 : i32, i32
  }
  func.func @transform_2(%arg0: i32) -> (i32, i32) {
    %c0_i32 = arith.constant 0 : i32
    %c0_i32_0 = arith.constant 0 : i32
    %c0_i32_1 = arith.constant 0 : i32
    return %c0_i32, %c0_i32_0 : i32, i32
  }
  func.func @transform_3(%arg0: i32) -> (i32, i32) {
    %c0_i32 = arith.constant 0 : i32
    %c0_i32_0 = arith.constant 0 : i32
    %c0_i32_1 = arith.constant 0 : i32
    return %c0_i32, %c0_i32_0 : i32, i32
  }
  func.func @transform_4(%arg0: i32) -> (i32, i32) {
    %c0_i32 = arith.constant 0 : i32
    %c0_i32_0 = arith.constant 0 : i32
    %c0_i32_1 = arith.constant 0 : i32
    return %c0_i32, %c0_i32_0 : i32, i32
  }
  func.func @transform_5(%arg0: i32) -> (i32, i32, i32) {
    %c0_i32 = arith.constant 0 : i32
    %c0_i32_0 = arith.constant 0 : i32
    %c0_i32_1 = arith.constant 0 : i32
    %c0_i32_2 = arith.constant 0 : i32
    return %c0_i32, %c0_i32_0, %c0_i32_1 : i32, i32, i32
  }
  func.func @transform_6(%arg0: i32) -> (i32, i32) {
    %c0_i32 = arith.constant 0 : i32
    %c0_i32_0 = arith.constant 0 : i32
    %c0_i32_1 = arith.constant 0 : i32
    return %c0_i32, %c0_i32_0 : i32, i32
  }
  func.func @transform_7(%arg0: i32) -> (i32, i32) {
    %c0_i32 = arith.constant 0 : i32
    %c0_i32_0 = arith.constant 0 : i32
    %c0_i32_1 = arith.constant 0 : i32
    return %c0_i32, %c0_i32_0 : i32, i32
  }
  func.func @transform_8(%arg0: i32) -> (i32, i32) {
    %c0_i32 = arith.constant 0 : i32
    %c0_i32_0 = arith.constant 0 : i32
    %c0_i32_1 = arith.constant 0 : i32
    return %c0_i32, %c0_i32_0 : i32, i32
  }
  func.func @transform_9(%arg0: i32) -> (i32, i32) {
    %c0_i32 = arith.constant 0 : i32
    %c0_i32_0 = arith.constant 0 : i32
    %c0_i32_1 = arith.constant 0 : i32
    return %c0_i32, %c0_i32_0 : i32, i32
  }
  func.func @transform_10(%arg0: i32) -> (i32, i32) {
    %c0_i32 = arith.constant 0 : i32
    %c0_i32_0 = arith.constant 0 : i32
    %c0_i32_1 = arith.constant 0 : i32
    return %c0_i32, %c0_i32_0 : i32, i32
  }
  func.func @transform_11(%arg0: i32) -> (i32, i32) {
    %c0_i32 = arith.constant 0 : i32
    %c0_i32_0 = arith.constant 0 : i32
    %c0_i32_1 = arith.constant 0 : i32
    return %c0_i32, %c0_i32_0 : i32, i32
  }
  func.func @transform_12(%arg0: i32) -> (i32, i32) {
    %c0_i32 = arith.constant 0 : i32
    %c0_i32_0 = arith.constant 0 : i32
    %c0_i32_1 = arith.constant 0 : i32
    return %c0_i32, %c0_i32_0 : i32, i32
  }
  func.func @transform_13(%arg0: i32) -> (i32, i32) {
    %c0_i32 = arith.constant 0 : i32
    %c0_i32_0 = arith.constant 0 : i32
    return %arg0, %c0_i32 : i32, i32
  }
}

</mosaic_0001>

<bundles_post_ra>
// kernel: tpu_custom_call.1
= control target key start
LH: loop header
LB: loop body
LE: loop exit
PB: predicated region body
PF: predicated region fallthrough
CT: control target
= control target key end

     0   :  { %s1791_s14 = smov 118   ;;  %s3267_s0 = inlined_call_operand.vmem [shape: f32[8,256], index: 0, kind: input, shape index: {}]   ;;  %s3268_s1 = inlined_call_operand.vmem [shape: f32[112,320], index: 1, kind: input, shape index: {}]   ;;  %s3269_s2 = inlined_call_operand.vmem [shape: f32[1,320], index: 2, kind: input, shape index: {}]   ;;  %s3270_s3 = inlined_call_operand.vmem [shape: f32[1,320], index: 3, kind: input, shape index: {}]   ;;  %s3271_s4 = inlined_call_operand.vmem [shape: f32[1,320], index: 4, kind: input, shape index: {}]   ;;  %s3272_s5 = inlined_call_operand.vmem [shape: f32[10,32,128], index: 5, kind: input, shape index: {}]   ;;  %s3273_s6 = inlined_call_operand.vmem [shape: f32[1,128], index: 6, kind: input, shape index: {}]   ;;  %s3274_s7 = inlined_call_operand.vmem [shape: f32[128,64], index: 7, kind: input, shape index: {}]   ;;  %s3275_s8 = inlined_call_operand.vmem [shape: f32[1,64], index: 8, kind: input, shape index: {}]   ;;  %s3276_s9 = inlined_call_operand.vmem [shape: f32[64,32], index: 9, kind: input, shape index: {}]   ;;  %s3277_s10 = inlined_call_operand.vmem [shape: f32[1,32], index: 10, kind: input, shape index: {}]   ;;  %s3278_s11 = inlined_call_operand.vmem [shape: f32[32,128], index: 11, kind: input, shape index: {}]   ;;  %s3279_s12 = inlined_call_operand.vmem [shape: f32[1,128], index: 12, kind: input, shape index: {}]   ;;  %s3280_s13 = inlined_call_operand.hbm [shape: f32[8,128], index: 13, kind: output, shape index: {}]  }
   0x1   :  { %v1877_v0 = vld [vmem:[%s3268_s1 + $0x138] sm:$0xff]  ;;  %v1882_v1 = vld [vmem:[%s3267_s0] sm:$0xff]  ;;  %v1894_v3 = vld [vmem:[%s3268_s1 + $0x108] sm:$0xff] }
   0x2   :  { %v1887_v2 = vld [vmem:[%s3268_s1 + $0x120] sm:$0xff]  ;;  %105 = vmatpush.msra.mxu0 %v1877_v0  ;;  %223 = vrot.lane.b32.xlu0 %v1882_v1, %s1791_s14  ;;  %v1906_v5 = vld [vmem:[%s3268_s1 + $0xf0] sm:$0xff]  ;;  %v1912_v6 = vld [vmem:[%s3268_s1 + $0x128] sm:$0xff] }
   0x3   :  { %229 = vmatpush.msra.mxu3 %v1877_v0  ;;  %v1901_v4 = vld [vmem:[%s3268_s1 + $0x140] sm:$0xff]  ;;  %v1919_v7 = vld [vmem:[%s3268_s1 + $0x110] sm:$0xff]  ;;  %v1924_v8 = vld [vmem:[%s3268_s1 + $0xd8] sm:$0xff] }
   0x4   :  { %106 = vmatpush.msra.mxu0 %v1887_v2  ;;  %125 = vmatpush.msra.mxu1 %v1901_v4  ;;  %v1932_v9 = vld [vmem:[%s3268_s1 + $0xf8] sm:$0xff]  ;;  %v1937_v10 = vld [vmem:[%s3268_s1 + $0xc0] sm:$0xff]  ;;  %v1950_v12 = vld [vmem:[%s3268_s1 + $0x148] sm:$0xff] }
   0x5   :  { %230 = vmatpush.msra.mxu3 %v1887_v2  ;;  %v1945_v11 = vld [vmem:[%s3268_s1 + $0xe0] sm:$0xff]  ;;  %v1955_v13 = vld [vmem:[%s3268_s1 + $0x130] sm:$0xff]  ;;  %v1960_v14 = vld [vmem:[%s3268_s1 + $0xa8] sm:$0xff]  ;;  %145 = vmatpush.msra.mxu2 %v1950_v12 }
   0x6   :  { %107 = vmatpush.msra.mxu0 %v1894_v3  ;;  %126 = vmatpush.msra.mxu1 %v1912_v6  ;;  %3330 = vst [vmem:[#allocation5_spill] sm:$0xff] %v1945_v11  ;;  %v1968_v15 = vld [vmem:[%s3268_s1 + $0xc8] sm:$0xff]  ;;  %v1973_v16 = vld [vmem:[%s3268_s1 + $0x118] sm:$0xff]  ;;  %v1979_v17 = vld [vmem:[%s3268_s1 + $0x90] sm:$0xff] }
   0x7   :  { %231 = vmatpush.msra.mxu3 %v1894_v3  ;;  %3331 = vst [vmem:[#allocation6_spill] sm:$0xff] %v1968_v15  ;;  %v1984_v18 = vld [vmem:[%s3268_s1 + $0x78] sm:$0xff]  ;;  %146 = vmatpush.msra.mxu2 %v1955_v13  ;;  %v1992_v19 = vld [vmem:[%s3268_s1 + $0xb0] sm:$0xff]  ;;  %v2002_v21 = vld [vmem:[%s3268_s1 + $0x100] sm:$0xff] }
   0x8   :  { %108 = vmatpush.msra.mxu0 %v1906_v5  ;;  %127 = vmatpush.msra.mxu1 %v1919_v7  ;;  %3332 = vst [vmem:[#allocation7_spill] sm:$0xff] %v1992_v19  ;;  %v1997_v20 = vld [vmem:[%s3268_s1 + $0x98] sm:$0xff]  ;;  %v2010_v22 = vld [vmem:[%s3268_s1 + $0xe8] sm:$0xff] }
   0x9   :  { %232 = vmatpush.msra.mxu3 %v1906_v5  ;;  %3333 = vst [vmem:[#allocation8_spill] sm:$0xff] %v1997_v20  ;;  %147 = vmatpush.msra.mxu2 %v1973_v16 }
   0xa   :  { %109 = vmatpush.msra.mxu0 %v1924_v8  ;;  %128 = vmatpush.msra.mxu1 %v1932_v9 }
   0xb   :  { %233 = vmatpush.msra.mxu3 %v1924_v8 }
   0xc   :  { %110 = vmatpush.msra.mxu0 %v1937_v10  ;;  %129 = vmatpush.msra.mxu1 %v1945_v11 }
   0xd   :  { %234 = vmatpush.msra.mxu3 %v1937_v10 }
   0xe   :  { %111 = vmatpush.msra.mxu0 %v1960_v14  ;;  %130 = vmatpush.msra.mxu1 %v1968_v15 }
   0xf   :  { %235 = vmatpush.msra.mxu3 %v1960_v14 }
  0x10   :  { %112 = vmatpush.msra.mxu0 %v1979_v17 }
  0x11   :  { %18 = vsyncpa [#allocation3], 0  ;;  %v2017_v23 = vld [vmem:[%s3268_s1 + $0x60] sm:$0xff]  ;;  %131 = vmatpush.msra.mxu1 %v1992_v19  ;;  %148 = vmatpush.msra.mxu2 %v2002_v21  ;;  %v2030_v25 = vld [vmem:[%s3268_s1 + $0xd0] sm:$0xff]  ;;  %vm99_vm0 = vcmask 916480   ;;  %s1792_s14 = smov 108  }
  0x12   :  { %113 = vmatpush.msra.mxu0 %v1984_v18  ;;  %v2025_v24 = vld [vmem:[%s3268_s1 + $0x80] sm:$0xff]  ;;  %236 = vmatpush.msra.mxu3 %v1979_v17  ;;  %v2036_v26 = vld [vmem:[%s3268_s1 + $0x48] sm:$0xff]  ;;  %v2049_v28 = vld [vmem:[%s3268_s1 + $0xb8] sm:$0xff]  ;;  %vm386_vm1 = vcmask 883712   ;;  %vm334_vm2 = vcmask 261120   ;;  %s1796_s18 = smov 98  }
  0x13   :  { %3334 = vst [vmem:[#allocation9_spill] sm:$0xff] %v2025_v24  ;;  %132 = vmatpush.msra.mxu1 %v1997_v20  ;;  %149 = vmatpush.msra.mxu2 %v2010_v22  ;;  %v2044_v27 = vld [vmem:[%s3268_s1 + $0x68] sm:$0xff]  ;;  %v2055_v29 = vld [vmem:[%s3268_s1 + $0x30] sm:$0xff]  ;;  %v2068_v31 = vld [vmem:[%s3268_s1 + $0xa0] sm:$0xff]  ;;  %vm525_vm3 = vcmask 801792   ;;  %s1797_s27 = smov 88  }
  0x14   :  { %114 = vmatpush.msra.mxu0 %v2017_v23  ;;  %3335 = vst [vmem:[#allocation10_spill] sm:$0xff] %v2044_v27  ;;  %237 = vmatpush.msra.mxu3 %v1984_v18  ;;  %v2063_v30 = vld [vmem:[%s3268_s1 + $0x50] sm:$0xff]  ;;  %v2074_v32 = vld [vmem:[%s3268_s1 + $0x18] sm:$0xff]  ;;  %v2087_v34 = vld [vmem:[%s3268_s1 + $0x88] sm:$0xff]  ;;  %vm664_vm4 = vcmask 719872   ;;  %s1798_s21 = smov 78  }
  0x15   :  { %3336 = vst [vmem:[#allocation11_spill] sm:$0xff] %v2055_v29  ;;  %133 = vmatpush.msra.mxu1 %v2025_v24  ;;  %150 = vmatpush.msra.mxu2 %v2030_v25  ;;  %v2082_v33 = vld [vmem:[%s3268_s1 + $0x38] sm:$0xff]  ;;  %v2093_v35 = vld [vmem:[%s3268_s1] sm:$0xff]  ;;  %v2109_v37 = vld [vmem:[%s3268_s1 + $0x70] sm:$0xff]  ;;  %vm803_vm5 = vcmask 637952   ;;  %vm942_vm6 = vcmask 556032  }
  0x16   :  { %115 = vmatpush.msra.mxu0 %v2036_v26  ;;  %3337 = vst [vmem:[#allocation12_spill] sm:$0xff] %v2063_v30  ;;  %238 = vmatpush.msra.mxu3 %v2017_v23  ;;  %v2101_v36 = vld [vmem:[%s3268_s1 + $0x20] sm:$0xff]  ;;  %v2115_v38 = vld [vmem:[%s3268_s1 + $0x8] sm:$0xff]  ;;  %v2124_v39 = vld [vmem:[%s3268_s1 + $0x58] sm:$0xff]  ;;  %s1800_s22 = smov 58   ;;  %vm1081_vm7 = vcmask 474112  }
  0x17   :  { %3338 = vst [vmem:[#allocation13_spill] sm:$0xff] %v2074_v32  ;;  %134 = vmatpush.msra.mxu1 %v2044_v27  ;;  %151 = vmatpush.msra.mxu2 %v2049_v28  ;;  %v2132_v40 = vld [vmem:[%s3268_s1 + $0x40] sm:$0xff]  ;;  %v2141_v41 = vld [vmem:[%s3268_s1 + $0x28] sm:$0xff]  ;;  %v2149_v42 = vld [vmem:[%s3268_s1 + $0x10] sm:$0xff]  ;;  %s1801_s29 = smov 48   ;;  %vm1220_vm8 = vcmask 392192  }
  0x18   :  { %116 = vmatpush.msra.mxu0 %v2055_v29  ;;  %3339 = vst [vmem:[#allocation14_spill] sm:$0xff] %v2082_v33  ;;  %239 = vmatpush.msra.mxu3 %v2036_v26  ;;  %v2214_v44 = vld [vmem:[%s3267_s0 + $0x8] sm:$0xff]  ;;  %v89_v45 = vld [vmem:[%s3269_s2] sm:$0x7]  ;;  %s1793_s2 = smov 64   ;;  %vm1359_vm9 = vcmask 310272  }
  0x19   :  { %3340 = vst [vmem:[#allocation15_spill] sm:$0xff] %v2093_v35  ;;  %135 = vmatpush.msra.mxu1 %v2063_v30  ;;  %152 = vmatpush.msra.mxu2 %v2068_v31  ;;  %v2221_v46 = vperm.slane %v89_v45, 0  ;;  %v90_v47 = vld [vmem:[%s3270_s3] sm:$0x7]  ;;  %v2229_v50 = vperm.slane %v89_v45, 1  ;;  %s1794_s3 = smov 96  }
  0x1a   :  { %117 = vmatpush.msra.mxu0 %v2074_v32  ;;  %3341 = vst [vmem:[#allocation16_spill] sm:$0xff] %v2101_v36  ;;  %240 = vmatpush.msra.mxu3 %v2055_v29  ;;  %v91_v48 = vld [vmem:[%s3271_s4] sm:$0x7]  ;;  %v2232_v52 = vperm.slane %v90_v47, 0  ;;  %v2237_v57 = vperm.slane %v90_v47, 1  ;;  %s1795_s4 = smov 32  }
  0x1b   :  { %136 = vmatpush.msra.mxu1 %v2082_v33  ;;  %153 = vmatpush.msra.mxu2 %v2087_v34  ;;  %3342 = vst [vmem:[#allocation17_spill] sm:$0xff] %v2115_v38  ;;  %v2234_v54 = vperm.slane %v91_v48, 0  ;;  %v2240_v60 = vperm.slane %v91_v48, 1  ;;  %vm1553_vm10 = vcmask 523264  }
  0x1c   :  { %118 = vmatpush.msra.mxu0 %v2093_v35  ;;  %241 = vmatpush.msra.mxu3 %v2074_v32 }
  0x1d   :  { %1626 = vmatmul.msk.f32.vlgmr.msra.gmra.mxu0 %vm99_vm0, %v1882_v1  ;;  %137 = vmatpush.msra.mxu1 %v2101_v36 }
  0x1e   :  { %154 = vmatpush.msra.mxu2 %v2109_v37  ;;  %249 = vmatpush.msrb.mxu0 %v1901_v4 }
  0x1f   :  { %138 = vmatpush.msra.mxu1 %v2115_v38  ;;  %242 = vmatpush.msra.mxu3 %v2093_v35 }
  0x20   :  { %1627 = vmatmul.msk.f32.vlgmr.msra.gmra.mxu1 %vm99_vm0, %v1882_v1  ;;  %155 = vmatpush.msra.mxu2 %v2124_v39 }
  0x21   :  { %269 = vmatpush.msrb.mxu1 %v1950_v12  ;;  %250 = vmatpush.msrb.mxu0 %v1912_v6 }
  0x22   :  { %156 = vmatpush.msra.mxu2 %v2132_v40  ;;  %384 = vrot.lane.b32.xlu2 %v2214_v44, %s1792_s14 }
  0x23   :  { %270 = vmatpush.msrb.mxu1 %v1955_v13  ;;  %251 = vmatpush.msrb.mxu0 %v1919_v7 }
  0x24   :  { %157 = vmatpush.msra.mxu2 %v2141_v41 }
  0x25   :  { %271 = vmatpush.msrb.mxu1 %v1973_v16  ;;  %252 = vmatpush.msrb.mxu0 %v1932_v9 }
  0x26   :  { %158 = vmatpush.msra.mxu2 %v2149_v42 }
  0x27   :  { %1628 = vmatmul.msk.f32.vlgmr.msra.gmra.mxu2 %vm99_vm0, %v1882_v1  ;;  %272 = vmatpush.msrb.mxu1 %v2002_v21 }
  0x28   :  { %253 = vmatpush.msrb.mxu0 %v1945_v11  ;;  %392 = vmatpush.msrb.mxu2 %v1877_v0 }
  0x29   :  { %273 = vmatpush.msrb.mxu1 %v2010_v22 }
  0x2a   :  { %254 = vmatpush.msrb.mxu0 %v1968_v15  ;;  %393 = vmatpush.msrb.mxu2 %v1887_v2 }
  0x2b   :  { %274 = vmatpush.msrb.mxu1 %v2030_v25 }
  0x2c   :  { %255 = vmatpush.msrb.mxu0 %v1992_v19  ;;  %394 = vmatpush.msrb.mxu2 %v1894_v3 }
  0x2d   :  { %275 = vmatpush.msrb.mxu1 %v2049_v28 }
  0x2e   :  { %256 = vmatpush.msrb.mxu0 %v1997_v20  ;;  %395 = vmatpush.msrb.mxu2 %v1906_v5 }
  0x2f   :  { %276 = vmatpush.msrb.mxu1 %v2068_v31 }
  0x30   :  { %257 = vmatpush.msrb.mxu0 %v2025_v24  ;;  %396 = vmatpush.msrb.mxu2 %v1924_v8 }
  0x31   :  { %277 = vmatpush.msrb.mxu1 %v2087_v34 }
  0x32   :  { %258 = vmatpush.msrb.mxu0 %v2044_v27  ;;  %397 = vmatpush.msrb.mxu2 %v1937_v10 }
  0x33   :  { %278 = vmatpush.msrb.mxu1 %v2109_v37 }
  0x34   :  { %259 = vmatpush.msrb.mxu0 %v2063_v30  ;;  %398 = vmatpush.msrb.mxu2 %v1960_v14 }
  0x35   :  { %279 = vmatpush.msrb.mxu1 %v2124_v39 }
  0x36   :  { %260 = vmatpush.msrb.mxu0 %v2082_v33  ;;  %399 = vmatpush.msrb.mxu2 %v1979_v17 }
  0x37   :  { %280 = vmatpush.msrb.mxu1 %v2132_v40 }
  0x38   :  { %261 = vmatpush.msrb.mxu0 %v2101_v36  ;;  %400 = vmatpush.msrb.mxu2 %v1984_v18 }
  0x39   :  { %281 = vmatpush.msrb.mxu1 %v2141_v41 }
  0x3a   :  { %262 = vmatpush.msrb.mxu0 %v2115_v38  ;;  %401 = vmatpush.msrb.mxu2 %v2017_v23 }
  0x3b   :  { %282 = vmatpush.msrb.mxu1 %v2149_v42 }
  0x3c   :  { %402 = vmatpush.msrb.mxu2 %v2036_v26 }
  0x3e   :  { %403 = vmatpush.msrb.mxu2 %v2055_v29 }
  0x40   :  { %404 = vmatpush.msrb.mxu2 %v2074_v32 }
  0x42   :  { %405 = vmatpush.msrb.mxu2 %v2093_v35 }
  0x44   :  { %551 = vmatpush.msra.mxu2 %v1901_v4 }
  0x46   :  { %552 = vmatpush.msra.mxu2 %v1912_v6 }
  0x48   :  { %553 = vmatpush.msra.mxu2 %v1919_v7 }
  0x4a   :  { %554 = vmatpush.msra.mxu2 %v1932_v9 }
  0x4c   :  { %555 = vmatpush.msra.mxu2 %v1945_v11 }
  0x4e   :  { %556 = vmatpush.msra.mxu2 %v1968_v15 }
  0x50   :  { %557 = vmatpush.msra.mxu2 %v1992_v19 }
  0x52   :  { %558 = vmatpush.msra.mxu2 %v1997_v20 }
  0x54   :  { %559 = vmatpush.msra.mxu2 %v2025_v24 }
  0x56   :  { %560 = vmatpush.msra.mxu2 %v2044_v27 }
  0x58   :  { %561 = vmatpush.msra.mxu2 %v2063_v30 }
  0x5a   :  { %562 = vmatpush.msra.mxu2 %v2082_v33 }
  0x5c   :  { %563 = vmatpush.msra.mxu2 %v2101_v36 }
  0x5e   :  { %564 = vmatpush.msra.mxu2 %v2115_v38 }
  0x74   :  { %v224_v43 = vpop.permute.xlu0 %223 }
  0x75   :  { %1629 = vmatmul.msk.f32.vlgmr.msra.gmra.mxu3 %vm99_vm0, %v224_v43  ;;  %1630 = vmatmul.msk.f32.vlgmr.msrb.gmra.mxu0 %vm99_vm0, %v224_v43 }
  0x76   :  { %1631 = vmatmul.msk.f32.vlgmr.msrb.gmra.mxu1 %vm99_vm0, %v224_v43  ;;  %v2255_v43 = vperm.slane %v89_v45, 2 }
  0x9a   :  { %v120_v49 = vpop.f32.mrf.mxu0 }
  0x9b   :  { %v121_v51 = vadd.f32 %v120_v49, %v2221_v46 }
  0x9d   :  { %v163_v53 = vmax.f32 %v121_v51, 0.0  ;;  %v140_v55 = vpop.f32.mrf.mxu1 }
  0x9e   :  { %v141_v56 = vadd.f32 %v140_v55, %v2229_v50 }
  0x9f   :  { %v173_v58 = vmul.f32 %v2232_v52, %v163_v53  ;;  %v2262_v53 = vperm.slane %v90_v47, 2  ;;  %v222_v47 = vld [vmem:[%s3272_s5 + $0x18] sm:$0xff] }
  0xa0   :  { %v164_v59 = vmax.f32 %v141_v56, 0.0  ;;  %v2266_v56 = vperm.slane %v91_v48, 2  ;;  %v221_v48 = vld [vmem:[%s3272_s5 + $0x10] sm:$0xff]  ;;  %373 = vmatpush.msrb.mxu3 %v222_v47 }
  0xa1   :  { %v2243_v61 = vadd.f32 %v2234_v54, %v173_v58 }
  0xa2   :  { %v174_v62 = vmul.f32 %v2237_v57, %v164_v59  ;;  %374 = vmatpush.msrb.mxu3 %v221_v48 }
  0xa3   :  { %191 = vrot.lane.b32.xlu1 %v2243_v61, %s1793_s2  ;;  %187 = vrot.lane.b32.xlu0 %v2243_v61, %s1794_s3 }
  0xa4   :  { %v2251_v63 = vadd.f32 %v2240_v60, %v174_v62 }
  0xa6   :  { %201 = vrot.lane.b32.xlu2 %v2251_v63, %s1794_s3 }
  0xaa   :  { %v160_v49 = vpop.f32.mrf.mxu2 }
  0xab   :  { %195 = vrot.lane.b32.xlu1 %v2243_v61, %s1795_s4  ;;  %209 = vrot.lane.b32.xlu0 %v2251_v63, %s1795_s4  ;;  %v161_v51 = vadd.f32 %v160_v49, %v2255_v43 }
  0xad   :  { %v165_v55 = vmax.f32 %v161_v51, 0.0  ;;  %v220_v51 = vld [vmem:[%s3272_s5 + $0x8] sm:$0xff] }
  0xae   :  { %205 = vrot.lane.b32.xlu2 %v2251_v63, %s1793_s2  ;;  %375 = vmatpush.msrb.mxu3 %v220_v51 }
  0xaf   :  { %v175_v45 = vmul.f32 %v2262_v53, %v165_v55  ;;  %v219_v55 = vld [vmem:[%s3272_s5] sm:$0xff] }
  0xb0   :  { %376 = vmatpush.msrb.mxu3 %v219_v55  ;;  %v385_v55 = vpop.permute.xlu2 %384 }
  0xb1   :  { %v2270_v58 = vadd.f32 %v2266_v56, %v175_v45 }
  0xb2   :  { %412 = vmatpush.msra.mxu3 %v1901_v4 }
  0xb3   :  { %382 = vrot.lane.b32.xlu1 %v1882_v1, %s1792_s14 }
  0xb4   :  { %413 = vmatpush.msra.mxu3 %v1912_v6 }
  0xb6   :  { %215 = vrot.lane.b32.xlu2 %v2270_v58, %s1794_s3  ;;  %414 = vmatpush.msra.mxu3 %v1919_v7 }
  0xb8   :  { %415 = vmatpush.msra.mxu3 %v1932_v9 }
  0xba   :  { %416 = vmatpush.msra.mxu3 %v1945_v11 }
  0xbc   :  { %417 = vmatpush.msra.mxu3 %v1968_v15 }
  0xbe   :  { %418 = vmatpush.msra.mxu3 %v1992_v19 }
  0xc0   :  { %419 = vmatpush.msra.mxu3 %v1997_v20 }
  0xc2   :  { %420 = vmatpush.msra.mxu3 %v2025_v24 }
  0xc4   :  { %421 = vmatpush.msra.mxu3 %v2044_v27 }
  0xc6   :  { %422 = vmatpush.msra.mxu3 %v2063_v30 }
  0xc8   :  { %423 = vmatpush.msra.mxu3 %v2082_v33 }
  0xca   :  { %424 = vmatpush.msra.mxu3 %v2101_v36 }
  0xcc   :  { %425 = vmatpush.msra.mxu3 %v2115_v38 }
  0xf2   :  { %v264_v59 = vpop.f32.mrf.mxu0 }
  0xf3   :  { %v265_v62 = vadd.f32 %v264_v59, %v2229_v50 }
  0xf5   :  { %v288_v49 = vmax.f32 %v265_v62, 0.0 }
  0xf7   :  { %v291_v45 = vmul.f32 %v288_v49, %v2237_v57  ;;  %v284_v49 = vpop.f32.mrf.mxu1 }
  0xf8   :  { %v244_v35 = vpop.f32.mrf.mxu3 }
  0xf9   :  { %v2291_v32 = vadd.f32 %v291_v45, %v2240_v60  ;;  %v245_v47 = vadd.f32 %v244_v35, %v2221_v46  ;;  %v285_v35 = vadd.f32 %v284_v49, %v2255_v43 }
  0xfb   :  { %v287_v48 = vmax.f32 %v245_v47, 0.0  ;;  %315 = vrot.lane.b32.xlu2 %v2291_v32, %s1793_s2  ;;  %v289_v51 = vmax.f32 %v285_v35, 0.0 }
  0xfd   :  { %v290_v59 = vmul.f32 %v287_v48, %v2232_v52  ;;  %v292_v45 = vmul.f32 %v289_v51, %v2262_v53 }
  0xff   :  { %v2301_v62 = vadd.f32 %v290_v59, %v2234_v54  ;;  %v2322_v47 = vadd.f32 %v292_v45, %v2266_v56 }
 0x100   :  { %v202_v48 = vpop.permute.xlu2 %201 }
 0x101   :  { %297 = vrot.lane.b32.xlu1 %v2301_v62, %s1794_s3  ;;  %301 = vrot.lane.b32.xlu0 %v2301_v62, %s1793_s2 }
 0x108   :  { %v206_v30 = vpop.permute.xlu2 %205 }
 0x109   :  { %311 = vrot.lane.b32.xlu1 %v2291_v32, %s1794_s3  ;;  %305 = vrot.lane.b32.xlu0 %v2301_v62, %s1795_s4 }
 0x110   :  { %v216_v38 = vpop.permute.xlu2 %215 }
 0x111   :  { %325 = vrot.lane.b32.xlu1 %v2322_v47, %s1794_s3  ;;  %319 = vrot.lane.b32.xlu0 %v2291_v32, %s1795_s4 }
 0x115   :  { %v192_v59 = vpop.permute.xlu1 %191  ;;  %v188_v49 = vpop.permute.xlu0 %187 }
 0x116   :  { %v190_v35 = vmax.f32 %v2243_v61, %v188_v49 }
 0x118   :  { %v194_v51 = vmax.f32 %v190_v35, %v192_v59 }
 0x11d   :  { %v196_v45 = vpop.permute.xlu1 %195  ;;  %v210_v20 = vpop.permute.xlu0 %209 }
 0x11e   :  { %v198_v27 = vmax.f32 %v194_v51, %v196_v45 }
 0x120   :  { %v199_v33 = vmax.f32 %v198_v27, %v2251_v63 }
 0x122   :  { %v204_v24 = vmax.f32 %v199_v33, %v202_v48 }
 0x124   :  { %v208_v19 = vmax.f32 %v204_v24, %v206_v30  ;;  %v1632_v24 = vld [vmem:[%s3272_s5 + $0x20] sm:$0xff] }
 0x125   :  { %v383_v15 = vpop.permute.xlu1 %382 }
 0x126   :  { %v2333_v11 = vsel %vm386_vm1, %v383_v15, %v385_v55  ;;  %v212_v36 = vmax.f32 %v208_v19, %v210_v20  ;;  %v1635_v15 = vld [vmem:[%s3272_s5 + $0x38] sm:$0xff]  ;;  %v1634_v19 = vld [vmem:[%s3272_s5 + $0x30] sm:$0xff]  ;;  %v1633_v20 = vld [vmem:[%s3272_s5 + $0x28] sm:$0xff] }
 0x127   :  { %1638 = vmatmul.msk.f32.vlgmr.msrb.gmra.mxu2 %vm99_vm0, %v2333_v11  ;;  %350 = vmatpush.msra.mxu0 %v1635_v15 }
 0x128   :  { %v213_v61 = vmax.f32 %v212_v36, %v2270_v58  ;;  %710 = vmatpush.msrb.mxu2 %v1950_v12 }
 0x129   :  { %351 = vmatpush.msra.mxu0 %v1634_v19 }
 0x12a   :  { %v218_v59 = vmax.f32 %v213_v61, %v216_v38  ;;  %711 = vmatpush.msrb.mxu2 %v1955_v13 }
 0x12b   :  { %352 = vmatpush.msra.mxu0 %v1633_v20 }
 0x12c   :  { %1637 = vmatmul.msk.f32.vlgmr.msrb.gmra.mxu3 %vm334_vm2, %v218_v59  ;;  %712 = vmatpush.msrb.mxu2 %v1973_v16 }
 0x12d   :  { %571 = vmatpush.msrb.mxu3 %v1950_v12  ;;  %353 = vmatpush.msra.mxu0 %v1632_v24 }
 0x12e   :  { %713 = vmatpush.msrb.mxu2 %v2002_v21 }
 0x12f   :  { %572 = vmatpush.msrb.mxu3 %v1955_v13  ;;  %432 = vmatpush.msrb.mxu0 %v1950_v12 }
 0x130   :  { %714 = vmatpush.msrb.mxu2 %v2010_v22 }
 0x131   :  { %573 = vmatpush.msrb.mxu3 %v1973_v16  ;;  %433 = vmatpush.msrb.mxu0 %v1955_v13 }
 0x132   :  { %715 = vmatpush.msrb.mxu2 %v2030_v25 }
 0x133   :  { %574 = vmatpush.msrb.mxu3 %v2002_v21  ;;  %434 = vmatpush.msrb.mxu0 %v1973_v16 }
 0x134   :  { %1639 = vmatmul.msk.f32.vlgmr.msra.gmra.mxu3 %vm99_vm0, %v2333_v11  ;;  %716 = vmatpush.msrb.mxu2 %v2049_v28 }
 0x135   :  { %575 = vmatpush.msrb.mxu3 %v2010_v22  ;;  %435 = vmatpush.msrb.mxu0 %v2002_v21 }
 0x136   :  { %717 = vmatpush.msrb.mxu2 %v2068_v31 }
 0x137   :  { %576 = vmatpush.msrb.mxu3 %v2030_v25  ;;  %436 = vmatpush.msrb.mxu0 %v2010_v22 }
 0x138   :  { %718 = vmatpush.msrb.mxu2 %v2087_v34 }
 0x139   :  { %577 = vmatpush.msrb.mxu3 %v2049_v28  ;;  %437 = vmatpush.msrb.mxu0 %v2030_v25 }
 0x13a   :  { %719 = vmatpush.msrb.mxu2 %v2109_v37 }
 0x13b   :  { %578 = vmatpush.msrb.mxu3 %v2068_v31  ;;  %438 = vmatpush.msrb.mxu0 %v2049_v28 }
 0x13c   :  { %720 = vmatpush.msrb.mxu2 %v2124_v39 }
 0x13d   :  { %579 = vmatpush.msrb.mxu3 %v2087_v34  ;;  %439 = vmatpush.msrb.mxu0 %v2068_v31 }
 0x13e   :  { %721 = vmatpush.msrb.mxu2 %v2132_v40 }
 0x13f   :  { %580 = vmatpush.msrb.mxu3 %v2109_v37  ;;  %440 = vmatpush.msrb.mxu0 %v2087_v34 }
 0x140   :  { %722 = vmatpush.msrb.mxu2 %v2141_v41 }
 0x141   :  { %581 = vmatpush.msrb.mxu3 %v2124_v39  ;;  %441 = vmatpush.msrb.mxu0 %v2109_v37 }
 0x142   :  { %723 = vmatpush.msrb.mxu2 %v2149_v42 }
 0x143   :  { %582 = vmatpush.msrb.mxu3 %v2132_v40  ;;  %442 = vmatpush.msrb.mxu0 %v2124_v39 }
 0x145   :  { %583 = vmatpush.msrb.mxu3 %v2141_v41  ;;  %443 = vmatpush.msrb.mxu0 %v2132_v40 }
 0x147   :  { %584 = vmatpush.msrb.mxu3 %v2149_v42  ;;  %444 = vmatpush.msrb.mxu0 %v2141_v41 }
 0x149   :  { %445 = vmatpush.msrb.mxu0 %v2149_v42 }
 0x155   :  { %v316_v49 = vpop.permute.xlu2 %315 }
 0x173   :  { %v298_v27 = vpop.permute.xlu1 %297  ;;  %v302_v30 = vpop.permute.xlu0 %301 }
 0x174   :  { %v300_v33 = vmax.f32 %v2301_v62, %v298_v27 }
 0x176   :  { %v304_v36 = vmax.f32 %v300_v33, %v302_v30 }
 0x17b   :  { %v306_v38 = vpop.permute.xlu0 %305  ;;  %v312_v58 = vpop.permute.xlu1 %311 }
 0x17c   :  { %v308_v63 = vmax.f32 %v304_v36, %v306_v38 }
 0x17e   :  { %v309_v55 = vmax.f32 %v308_v63, %v2291_v32 }
 0x180   :  { %v314_v48 = vmax.f32 %v309_v55, %v312_v58 }
 0x182   :  { %v318_v35 = vmax.f32 %v314_v48, %v316_v49  ;;  %v1644_v49 = vld [vmem:[%s3272_s5 + $0x58] sm:$0xff] }
 0x183   :  { %v320_v51 = vpop.permute.xlu0 %319  ;;  %v326_v59 = vpop.permute.xlu1 %325  ;;  %512 = vmatpush.msra.mxu1 %v1644_v49 }
 0x184   :  { %v322_v45 = vmax.f32 %v318_v35, %v320_v51  ;;  %v1643_v35 = vld [vmem:[%s3272_s5 + $0x50] sm:$0xff] }
 0x185   :  { %513 = vmatpush.msra.mxu1 %v1643_v35 }
 0x186   :  { %v323_v61 = vmax.f32 %v322_v45, %v2322_v47  ;;  %v1642_v45 = vld [vmem:[%s3272_s5 + $0x48] sm:$0xff] }
 0x187   :  { %514 = vmatpush.msra.mxu1 %v1642_v45 }
 0x188   :  { %v328_v15 = vmax.f32 %v323_v61, %v326_v59  ;;  %v1641_v61 = vld [vmem:[%s3272_s5 + $0x40] sm:$0xff]  ;;  %v3343_v59 = vld [vmem:[#allocation13_spill] sm:$0xff] }
 0x189   :  { %515 = vmatpush.msra.mxu1 %v1641_v61 }
 0x18a   :  { %1636 = vmatmul.msk.f32.vlgmr.msra.gmra.mxu0 %vm334_vm2, %v328_v15  ;;  %v3344_v15 = vld [vmem:[#allocation15_spill] sm:$0xff] }
 0x18b   :  { %531 = vmatpush.msrb.mxu1 %v1877_v0 }
 0x18d   :  { %532 = vmatpush.msrb.mxu1 %v1887_v2 }
 0x18f   :  { %533 = vmatpush.msrb.mxu1 %v1894_v3 }
 0x191   :  { %534 = vmatpush.msrb.mxu1 %v1906_v5 }
 0x192   :  { %1640 = vmatmul.msk.f32.vlgmr.msrb.gmra.mxu0 %vm99_vm0, %v2333_v11 }
 0x193   :  { %535 = vmatpush.msrb.mxu1 %v1924_v8 }
 0x195   :  { %536 = vmatpush.msrb.mxu1 %v1937_v10 }
 0x197   :  { %537 = vmatpush.msrb.mxu1 %v1960_v14 }
 0x199   :  { %538 = vmatpush.msrb.mxu1 %v1979_v17 }
 0x19b   :  { %539 = vmatpush.msrb.mxu1 %v1984_v18 }
 0x19d   :  { %540 = vmatpush.msrb.mxu1 %v2017_v23 }
 0x19f   :  { %541 = vmatpush.msrb.mxu1 %v2036_v26 }
 0x1a1   :  { %542 = vmatpush.msrb.mxu1 %v2055_v29 }
 0x1a3   :  { %543 = vmatpush.msrb.mxu1 %v3343_v59 }
 0x1a5   :  { %544 = vmatpush.msrb.mxu1 %v3344_v15 }
 0x1aa   :  { %v407_v62 = vpop.f32.mrf.mxu2 }
 0x1ab   :  { %v408_v19 = vadd.f32 %v407_v62, %v2221_v46 }
 0x1ad   :  { %v450_v20 = vmax.f32 %v408_v19, 0.0 }
 0x1af   :  { %v453_v32 = vmul.f32 %v450_v20, %v2232_v52  ;;  %v2403_v24 = vpop.f32.mrf.mxu3 }
 0x1b1   :  { %v456_v27 = vadd.f32 %v453_v32, %v2234_v54 }
 0x1b3   :  { %460 = vrot.lane.b32.xlu2 %v456_v27, %s1794_s3  ;;  %464 = vrot.lane.b32.xlu0 %v456_v27, %s1793_s2 }
 0x1b4   :  { %468 = vrot.lane.b32.xlu1 %v456_v27, %s1795_s4 }
 0x1b7   :  { %v427_v47 = vpop.f32.mrf.mxu3 }
 0x1b8   :  { %v428_v30 = vadd.f32 %v427_v47, %v2229_v50 }
 0x1ba   :  { %v451_v11 = vmax.f32 %v428_v30, 0.0 }
 0x1bc   :  { %v454_v33 = vmul.f32 %v451_v11, %v2237_v57 }
 0x1be   :  { %v457_v36 = vadd.f32 %v454_v33, %v2240_v60 }
 0x1c0   :  { %478 = vrot.lane.b32.xlu0 %v457_v36, %s1793_s2  ;;  %482 = vrot.lane.b32.xlu1 %v457_v36, %s1795_s4 }
 0x1c1   :  { %474 = vrot.lane.b32.xlu2 %v457_v36, %s1794_s3 }
 0x1c8   :  { %523 = vrot.lane.b32.xlu1 %v2214_v44, %s1796_s18  ;;  %521 = vrot.lane.b32.xlu0 %v1882_v1, %s1796_s18 }
 0x207   :  { %v2417_v38 = vpop.f32.mrf.mxu0 }
 0x20d   :  { %v461_v11 = vpop.permute.xlu2 %460 }
 0x20f   :  { %v447_v63 = vpop.f32.mrf.mxu0 }
 0x210   :  { %v448_v58 = vadd.f32 %v447_v63, %v2255_v43  ;;  %v463_v63 = vmax.f32 %v456_v27, %v461_v11  ;;  %v3345_v27 = vld [vmem:[#allocation5_spill] sm:$0xff] }
 0x212   :  { %v452_v55 = vmax.f32 %v448_v58, 0.0 }
 0x214   :  { %v455_v48 = vmul.f32 %v452_v55, %v2262_v53 }
 0x216   :  { %v458_v51 = vadd.f32 %v455_v48, %v2266_v56 }
 0x218   :  { %488 = vrot.lane.b32.xlu2 %v458_v51, %s1794_s3 }
 0x21b   :  { %v475_v49 = vpop.permute.xlu2 %474 }
 0x225   :  { %v465_v62 = vpop.permute.xlu0 %464 }
 0x226   :  { %v469_v19 = vpop.permute.xlu1 %468  ;;  %v467_v58 = vmax.f32 %v463_v63, %v465_v62  ;;  %v3347_v62 = vld [vmem:[#allocation7_spill] sm:$0xff] }
 0x228   :  { %v471_v55 = vmax.f32 %v467_v58, %v469_v19  ;;  %v3353_v19 = vld [vmem:[#allocation16_spill] sm:$0xff] }
 0x22a   :  { %v472_v48 = vmax.f32 %v471_v55, %v457_v36  ;;  %v3346_v36 = vld [vmem:[#allocation6_spill] sm:$0xff] }
 0x22c   :  { %v477_v35 = vmax.f32 %v472_v48, %v475_v49 }
 0x232   :  { %v479_v20 = vpop.permute.xlu0 %478  ;;  %v483_v32 = vpop.permute.xlu1 %482 }
 0x233   :  { %v481_v45 = vmax.f32 %v477_v35, %v479_v20  ;;  %v3354_v20 = vld [vmem:[#allocation17_spill] sm:$0xff] }
 0x235   :  { %v485_v61 = vmax.f32 %v481_v45, %v483_v32  ;;  %v379_v32 = vadd.f32 %v2403_v24, %v2417_v38 }
 0x237   :  { %v486_v15 = vmax.f32 %v485_v61, %v458_v51  ;;  %v3348_v51 = vld [vmem:[#allocation8_spill] sm:$0xff] }
 0x23a   :  { %v524_v47 = vpop.permute.xlu1 %523  ;;  %v522_v30 = vpop.permute.xlu0 %521 }
 0x23b   :  { %v526_v33 = vsel %vm525_vm3, %v522_v30, %v524_v47 }
 0x23c   :  { %1647 = vmatmul.msk.f32.vlgmr.msra.gmra.mxu2 %vm99_vm0, %v526_v33  ;;  %1648 = vmatmul.msk.f32.vlgmr.msrb.gmra.mxu3 %vm99_vm0, %v526_v33 }
 0x272   :  { %v489_v59 = vpop.permute.xlu2 %488 }
 0x273   :  { %v491_v29 = vmax.f32 %v486_v15, %v489_v59  ;;  %v3349_v59 = vld [vmem:[#allocation9_spill] sm:$0xff]  ;;  %v3352_v15 = vld [vmem:[#allocation14_spill] sm:$0xff] }
 0x275   :  { %1645 = vmatmul.msk.f32.vlgmr.msra.gmra.mxu1 %vm334_vm2, %v491_v29  ;;  %v3350_v29 = vld [vmem:[#allocation10_spill] sm:$0xff] }
 0x276   :  { %690 = vmatpush.msra.mxu1 %v1901_v4  ;;  %v3351_v4 = vld [vmem:[#allocation12_spill] sm:$0xff] }
 0x278   :  { %691 = vmatpush.msra.mxu1 %v1912_v6 }
 0x27a   :  { %692 = vmatpush.msra.mxu1 %v1919_v7 }
 0x27c   :  { %693 = vmatpush.msra.mxu1 %v1932_v9 }
 0x27d   :  { %1646 = vmatmul.msk.f32.vlgmr.msrb.gmra.mxu1 %vm99_vm0, %v526_v33 }
 0x27e   :  { %694 = vmatpush.msra.mxu1 %v3345_v27 }
 0x280   :  { %695 = vmatpush.msra.mxu1 %v3346_v36 }
 0x282   :  { %696 = vmatpush.msra.mxu1 %v3347_v62 }
 0x284   :  { %697 = vmatpush.msra.mxu1 %v3348_v51 }
 0x286   :  { %698 = vmatpush.msra.mxu1 %v3349_v59 }
 0x288   :  { %699 = vmatpush.msra.mxu1 %v3350_v29 }
 0x28a   :  { %700 = vmatpush.msra.mxu1 %v3351_v4 }
 0x28c   :  { %701 = vmatpush.msra.mxu1 %v3352_v15 }
 0x28e   :  { %702 = vmatpush.msra.mxu1 %v3353_v19 }
 0x290   :  { %703 = vmatpush.msra.mxu1 %v3354_v20 }
 0x292   :  { %849 = vmatpush.msrb.mxu1 %v1950_v12 }
 0x294   :  { %850 = vmatpush.msrb.mxu1 %v1955_v13 }
 0x296   :  { %851 = vmatpush.msrb.mxu1 %v1973_v16 }
 0x298   :  { %852 = vmatpush.msrb.mxu1 %v2002_v21 }
 0x29a   :  { %853 = vmatpush.msrb.mxu1 %v2010_v22 }
 0x29c   :  { %854 = vmatpush.msrb.mxu1 %v2030_v25 }
 0x29e   :  { %855 = vmatpush.msrb.mxu1 %v2049_v28 }
 0x2a0   :  { %856 = vmatpush.msrb.mxu1 %v2068_v31 }
 0x2a2   :  { %857 = vmatpush.msrb.mxu1 %v2087_v34 }
 0x2a4   :  { %858 = vmatpush.msrb.mxu1 %v2109_v37 }
 0x2a6   :  { %859 = vmatpush.msrb.mxu1 %v2124_v39 }
 0x2a8   :  { %860 = vmatpush.msrb.mxu1 %v2132_v40 }
 0x2aa   :  { %861 = vmatpush.msrb.mxu1 %v2141_v41 }
 0x2ac   :  { %862 = vmatpush.msrb.mxu1 %v2149_v42 }
 0x2bf   :  { %v566_v33 = vpop.f32.mrf.mxu2  ;;  %v586_v45 = vpop.f32.mrf.mxu3 }
 0x2c0   :  { %v567_v55 = vadd.f32 %v566_v33, %v2229_v50  ;;  %v587_v38 = vadd.f32 %v586_v45, %v2255_v43  ;;  %v1652_v33 = vld [vmem:[%s3272_s5 + $0x78] sm:$0xff] }
 0x2c1   :  { %651 = vmatpush.msra.mxu0 %v1652_v33 }
 0x2c2   :  { %v590_v35 = vmax.f32 %v567_v55, 0.0 }
 0x2c4   :  { %v593_v24 = vmul.f32 %v590_v35, %v2237_v57 }
 0x2c6   :  { %v596_v61 = vadd.f32 %v593_v24, %v2240_v60 }
 0x2f2   :  { %v517_v47 = vpop.f32.mrf.mxu1 }
 0x2f3   :  { %v2483_v30 = vadd.f32 %v517_v47, %v379_v32  ;;  %v591_v32 = vmax.f32 %v587_v38, 0.0 }
 0x2f5   :  { %v594_v47 = vmul.f32 %v591_v32, %v2262_v53 }
 0x2fa   :  { %v546_v11 = vpop.f32.mrf.mxu1 }
 0x2fb   :  { %v547_v63 = vadd.f32 %v546_v11, %v2221_v46  ;;  %v597_v11 = vadd.f32 %v594_v47, %v2266_v56 }
 0x2fd   :  { %v589_v58 = vmax.f32 %v547_v63, 0.0  ;;  %v1651_v63 = vld [vmem:[%s3272_s5 + $0x70] sm:$0xff] }
 0x2fe   :  { %652 = vmatpush.msra.mxu0 %v1651_v63 }
 0x2ff   :  { %v592_v48 = vmul.f32 %v589_v58, %v2232_v52  ;;  %v1650_v58 = vld [vmem:[%s3272_s5 + $0x68] sm:$0xff] }
 0x300   :  { %653 = vmatpush.msra.mxu0 %v1650_v58  ;;  %v2649_v58 = vld [vmem:[%s3268_s1 + $0x90] sm:$0xff] }
 0x301   :  { %v595_v49 = vadd.f32 %v592_v48, %v2234_v54  ;;  %3363 = vst [vmem:[#allocation10_spill] sm:$0xff] %v2649_v58 }
 0x303   :  { %607 = vrot.lane.b32.xlu1 %v595_v49, %s1795_s4  ;;  %603 = vrot.lane.b32.xlu0 %v595_v49, %s1793_s2 }
 0x304   :  { %599 = vrot.lane.b32.xlu2 %v595_v49, %s1794_s3 }
 0x30b   :  { %621 = vrot.lane.b32.xlu1 %v596_v61, %s1795_s4  ;;  %617 = vrot.lane.b32.xlu0 %v596_v61, %s1793_s2 }
 0x30c   :  { %613 = vrot.lane.b32.xlu2 %v596_v61, %s1794_s3 }
 0x313   :  { %662 = vrot.lane.b32.xlu1 %v2214_v44, %s1797_s27  ;;  %660 = vrot.lane.b32.xlu0 %v1882_v1, %s1797_s27  ;;  %v1649_v1 = vld [vmem:[%s3272_s5 + $0x60] sm:$0xff] }
 0x314   :  { %627 = vrot.lane.b32.xlu2 %v597_v11, %s1794_s3  ;;  %654 = vmatpush.msra.mxu0 %v1649_v1  ;;  %v2655_v1 = vld [vmem:[%s3268_s1 + $0x78] sm:$0xff] }
 0x315   :  { %3364 = vst [vmem:[#allocation12_spill] sm:$0xff] %v2655_v1 }
 0x316   :  { %670 = vmatpush.msrb.mxu0 %v1877_v0  ;;  %v3355_v0 = vld [vmem:[#allocation11_spill] sm:$0xff] }
 0x318   :  { %671 = vmatpush.msrb.mxu0 %v1887_v2  ;;  %v3356_v2 = vld [vmem:[#allocation13_spill] sm:$0xff] }
 0x31a   :  { %672 = vmatpush.msrb.mxu0 %v1894_v3  ;;  %v3357_v3 = vld [vmem:[#allocation15_spill] sm:$0xff] }
 0x31c   :  { %673 = vmatpush.msrb.mxu0 %v1906_v5 }
 0x31e   :  { %674 = vmatpush.msrb.mxu0 %v1924_v8 }
 0x320   :  { %675 = vmatpush.msrb.mxu0 %v1937_v10 }
 0x322   :  { %676 = vmatpush.msrb.mxu0 %v1960_v14 }
 0x324   :  { %677 = vmatpush.msrb.mxu0 %v1979_v17 }
 0x326   :  { %678 = vmatpush.msrb.mxu0 %v1984_v18 }
 0x328   :  { %679 = vmatpush.msrb.mxu0 %v2017_v23 }
 0x32a   :  { %680 = vmatpush.msrb.mxu0 %v2036_v26 }
 0x32c   :  { %681 = vmatpush.msrb.mxu0 %v3355_v0  ;;  %v2661_v0 = vld [vmem:[%s3268_s1 + $0x60] sm:$0xff] }
 0x32d   :  { %3365 = vst [vmem:[#allocation14_spill] sm:$0xff] %v2661_v0 }
 0x32e   :  { %682 = vmatpush.msrb.mxu0 %v3356_v2  ;;  %v2667_v2 = vld [vmem:[%s3268_s1 + $0x48] sm:$0xff] }
 0x32f   :  { %3366 = vst [vmem:[#allocation16_spill] sm:$0xff] %v2667_v2 }
 0x330   :  { %683 = vmatpush.msrb.mxu0 %v3357_v3  ;;  %v2673_v3 = vld [vmem:[%s3268_s1 + $0x30] sm:$0xff] }
 0x331   :  { %3367 = vst [vmem:[#allocation17_spill] sm:$0xff] %v2673_v3 }
 0x35e   :  { %v600_v5 = vpop.permute.xlu2 %599 }
 0x35f   :  { %v602_v8 = vmax.f32 %v595_v49, %v600_v5  ;;  %v2679_v5 = vld [vmem:[%s3268_s1 + $0x18] sm:$0xff] }
 0x360   :  { %3368 = vst [vmem:[#allocation11_spill] sm:$0xff] %v2679_v5 }
 0x366   :  { %v614_v35 = vpop.permute.xlu2 %613 }
 0x36e   :  { %v628_v32 = vpop.permute.xlu2 %627 }
 0x375   :  { %v608_v55 = vpop.permute.xlu1 %607  ;;  %v604_v10 = vpop.permute.xlu0 %603 }
 0x376   :  { %v606_v48 = vmax.f32 %v602_v8, %v604_v10  ;;  %v2685_v8 = vld [vmem:[%s3268_s1] sm:$0xff] }
 0x378   :  { %v610_v14 = vmax.f32 %v606_v48, %v608_v55 }
 0x37a   :  { %v611_v17 = vmax.f32 %v610_v14, %v596_v61  ;;  %v2535_v61 = vld [vmem:[%s3268_s1 + $0x140] sm:$0xff] }
 0x37c   :  { %v616_v45 = vmax.f32 %v611_v17, %v614_v35 }
 0x37d   :  { %v622_v18 = vpop.permute.xlu1 %621  ;;  %v618_v24 = vpop.permute.xlu0 %617 }
 0x37e   :  { %v620_v23 = vmax.f32 %v616_v45, %v618_v24 }
 0x380   :  { %v624_v38 = vmax.f32 %v620_v23, %v622_v18 }
 0x382   :  { %v625_v26 = vmax.f32 %v624_v38, %v597_v11  ;;  %v2643_v11 = vld [vmem:[%s3268_s1 + $0xa8] sm:$0xff] }
 0x383   :  { %3362 = vst [vmem:[#allocation9_spill] sm:$0xff] %v2643_v11 }
 0x384   :  { %v630_v47 = vmax.f32 %v625_v26, %v628_v32 }
 0x385   :  { %v663_v33 = vpop.permute.xlu1 %662  ;;  %v661_v63 = vpop.permute.xlu0 %660 }
 0x386   :  { %1653 = vmatmul.msk.f32.vlgmr.msra.gmra.mxu0 %vm334_vm2, %v630_v47  ;;  %v665_v49 = vsel %vm664_vm4, %v661_v63, %v663_v33 }
 0x387   :  { %1655 = vmatmul.msk.f32.vlgmr.msra.gmra.mxu1 %vm99_vm0, %v665_v49  ;;  %1656 = vmatmul.msk.f32.vlgmr.msrb.gmra.mxu2 %vm99_vm0, %v665_v49 }
 0x388   :  { %829 = vmatpush.msra.mxu0 %v2535_v61 }
 0x38a   :  { %830 = vmatpush.msra.mxu0 %v1912_v6 }
 0x38c   :  { %831 = vmatpush.msra.mxu0 %v1919_v7 }
 0x38e   :  { %1654 = vmatmul.msk.f32.vlgmr.msrb.gmra.mxu0 %vm99_vm0, %v665_v49 }
 0x38f   :  { %832 = vmatpush.msra.mxu0 %v1932_v9 }
 0x391   :  { %833 = vmatpush.msra.mxu0 %v3345_v27  ;;  %v2588_v27 = vld [vmem:[%s3267_s0] sm:$0xff] }
 0x393   :  { %834 = vmatpush.msra.mxu0 %v3346_v36  ;;  %v1660_v36 = vld [vmem:[%s3272_s5 + $0x98] sm:$0xff] }
 0x394   :  { %790 = vmatpush.msra.mxu3 %v1660_v36  ;;  %v2780_v36 = vld [vmem:[%s3268_s1 + $0x130] sm:$0xff] }
 0x395   :  { %835 = vmatpush.msra.mxu0 %v3347_v62  ;;  %v1659_v62 = vld [vmem:[%s3272_s5 + $0x90] sm:$0xff] }
 0x396   :  { %791 = vmatpush.msra.mxu3 %v1659_v62  ;;  %v2786_v62 = vld [vmem:[%s3268_s1 + $0x118] sm:$0xff] }
 0x397   :  { %836 = vmatpush.msra.mxu0 %v3348_v51  ;;  %v1658_v51 = vld [vmem:[%s3272_s5 + $0x88] sm:$0xff] }
 0x398   :  { %792 = vmatpush.msra.mxu3 %v1658_v51  ;;  %v2792_v51 = vld [vmem:[%s3268_s1 + $0x100] sm:$0xff] }
 0x399   :  { %837 = vmatpush.msra.mxu0 %v3349_v59  ;;  %v1657_v59 = vld [vmem:[%s3272_s5 + $0x80] sm:$0xff] }
 0x39a   :  { %793 = vmatpush.msra.mxu3 %v1657_v59  ;;  %v2798_v59 = vld [vmem:[%s3268_s1 + $0xe8] sm:$0xff] }
 0x39b   :  { %838 = vmatpush.msra.mxu0 %v3350_v29  ;;  %v2607_v29 = vld [vmem:[%s3268_s1 + $0x138] sm:$0xff] }
 0x39c   :  { %809 = vmatpush.msrb.mxu3 %v2607_v29 }
 0x39d   :  { %839 = vmatpush.msra.mxu0 %v3351_v4  ;;  %v2613_v4 = vld [vmem:[%s3268_s1 + $0x120] sm:$0xff] }
 0x39e   :  { %810 = vmatpush.msrb.mxu3 %v2613_v4 }
 0x39f   :  { %840 = vmatpush.msra.mxu0 %v3352_v15  ;;  %v2619_v15 = vld [vmem:[%s3268_s1 + $0x108] sm:$0xff] }
 0x3a0   :  { %3358 = vst [vmem:[#allocation5_spill] sm:$0xff] %v2619_v15  ;;  %811 = vmatpush.msrb.mxu3 %v2619_v15 }
 0x3a1   :  { %841 = vmatpush.msra.mxu0 %v3353_v19  ;;  %v2625_v19 = vld [vmem:[%s3268_s1 + $0xf0] sm:$0xff] }
 0x3a2   :  { %3359 = vst [vmem:[#allocation6_spill] sm:$0xff] %v2625_v19  ;;  %812 = vmatpush.msrb.mxu3 %v2625_v19 }
 0x3a3   :  { %842 = vmatpush.msra.mxu0 %v3354_v20  ;;  %v2631_v20 = vld [vmem:[%s3268_s1 + $0xd8] sm:$0xff] }
 0x3a4   :  { %3360 = vst [vmem:[#allocation7_spill] sm:$0xff] %v2631_v20  ;;  %813 = vmatpush.msrb.mxu3 %v2631_v20 }
 0x3a5   :  { %988 = vmatpush.msrb.mxu0 %v1950_v12 }
 0x3a7   :  { %989 = vmatpush.msrb.mxu0 %v1955_v13 }
 0x3a9   :  { %990 = vmatpush.msrb.mxu0 %v1973_v16 }
 0x3ab   :  { %991 = vmatpush.msrb.mxu0 %v2002_v21 }
 0x3ad   :  { %992 = vmatpush.msrb.mxu0 %v2010_v22 }
 0x3af   :  { %993 = vmatpush.msrb.mxu0 %v2030_v25 }
 0x3b1   :  { %994 = vmatpush.msrb.mxu0 %v2049_v28 }
 0x3b3   :  { %995 = vmatpush.msrb.mxu0 %v2068_v31 }
 0x3b5   :  { %996 = vmatpush.msrb.mxu0 %v2087_v34 }
 0x3b7   :  { %997 = vmatpush.msrb.mxu0 %v2109_v37 }
 0x3b9   :  { %998 = vmatpush.msrb.mxu0 %v2124_v39 }
 0x3bb   :  { %999 = vmatpush.msrb.mxu0 %v2132_v40 }
 0x3bd   :  { %1000 = vmatpush.msrb.mxu0 %v2141_v41 }
 0x3bf   :  { %1001 = vmatpush.msrb.mxu0 %v2149_v42 }
 0x403   :  { %v656_v6 = vpop.f32.mrf.mxu0 }
 0x404   :  { %v2567_v7 = vadd.f32 %v656_v6, %v2483_v30  ;;  %v705_v12 = vpop.f32.mrf.mxu1  ;;  %v2637_v30 = vld [vmem:[%s3268_s1 + $0xc0] sm:$0xff] }
 0x405   :  { %v706_v21 = vadd.f32 %v705_v12, %v2229_v50  ;;  %3361 = vst [vmem:[#allocation8_spill] sm:$0xff] %v2637_v30  ;;  %814 = vmatpush.msrb.mxu3 %v2637_v30  ;;  %v2695_v12 = vld [vmem:[%s3268_s1 + $0x128] sm:$0xff] }
 0x407   :  { %v729_v28 = vmax.f32 %v706_v21, 0.0  ;;  %815 = vmatpush.msrb.mxu3 %v2643_v11  ;;  %v2714_v21 = vld [vmem:[%s3268_s1 + $0xe0] sm:$0xff] }
 0x409   :  { %v732_v34 = vmul.f32 %v729_v28, %v2237_v57  ;;  %816 = vmatpush.msrb.mxu3 %v2649_v58  ;;  %v2732_v28 = vld [vmem:[%s3268_s1 + $0x98] sm:$0xff] }
 0x40a   :  { %v725_v31 = vpop.f32.mrf.mxu2 }
 0x40b   :  { %v685_v9 = vpop.f32.mrf.mxu0  ;;  %v726_v37 = vadd.f32 %v725_v31, %v2255_v43  ;;  %v735_v39 = vadd.f32 %v732_v34, %v2240_v60  ;;  %817 = vmatpush.msrb.mxu3 %v2655_v1  ;;  %v2738_v31 = vld [vmem:[%s3268_s1 + $0x80] sm:$0xff]  ;;  %v2744_v34 = vld [vmem:[%s3268_s1 + $0x68] sm:$0xff] }
 0x40c   :  { %v686_v13 = vadd.f32 %v685_v9, %v2221_v46 }
 0x40d   :  { %v730_v40 = vmax.f32 %v726_v37, 0.0  ;;  %818 = vmatpush.msrb.mxu3 %v2661_v0  ;;  %v2750_v37 = vld [vmem:[%s3268_s1 + $0x50] sm:$0xff] }
 0x40e   :  { %v728_v16 = vmax.f32 %v686_v13, 0.0  ;;  %v2701_v13 = vld [vmem:[%s3268_s1 + $0x110] sm:$0xff] }
 0x40f   :  { %v733_v41 = vmul.f32 %v730_v40, %v2262_v53  ;;  %819 = vmatpush.msrb.mxu3 %v2667_v2  ;;  %v2762_v40 = vld [vmem:[%s3268_s1 + $0x20] sm:$0xff] }
 0x410   :  { %v731_v22 = vmul.f32 %v728_v16, %v2232_v52  ;;  %v2708_v16 = vld [vmem:[%s3268_s1 + $0xf8] sm:$0xff] }
 0x411   :  { %v736_v42 = vadd.f32 %v733_v41, %v2266_v56  ;;  %820 = vmatpush.msrb.mxu3 %v2673_v3  ;;  %v2768_v41 = vld [vmem:[%s3268_s1 + $0x8] sm:$0xff] }
 0x412   :  { %v734_v25 = vadd.f32 %v731_v22, %v2234_v54  ;;  %v2720_v22 = vld [vmem:[%s3268_s1 + $0xc8] sm:$0xff] }
 0x413   :  { %821 = vmatpush.msrb.mxu3 %v2679_v5 }
 0x414   :  { %746 = vrot.lane.b32.xlu1 %v734_v25, %s1795_s4  ;;  %742 = vrot.lane.b32.xlu0 %v734_v25, %s1793_s2 }
 0x415   :  { %738 = vrot.lane.b32.xlu2 %v734_v25, %s1794_s3  ;;  %822 = vmatpush.msrb.mxu3 %v2685_v8 }
 0x41c   :  { %760 = vrot.lane.b32.xlu1 %v735_v39, %s1795_s4  ;;  %756 = vrot.lane.b32.xlu0 %v735_v39, %s1793_s2 }
 0x41d   :  { %752 = vrot.lane.b32.xlu2 %v735_v39, %s1794_s3 }
 0x424   :  { %801 = vrot.lane.b32.xlu1 %v2214_v44, %s1798_s21  ;;  %799 = vrot.lane.b32.xlu0 %v2588_v27, %s1798_s21  ;;  %s1802_s21 = smov 38  }
 0x425   :  { %766 = vrot.lane.b32.xlu2 %v736_v42, %s1794_s3 }
 0x46f   :  { %v739_v55 = vpop.permute.xlu2 %738 }
 0x470   :  { %v741_v10 = vmax.f32 %v734_v25, %v739_v55  ;;  %v2726_v25 = vld [vmem:[%s3268_s1 + $0xb0] sm:$0xff] }
 0x471   :  { %v2804_v55 = vld [vmem:[%s3268_s1 + $0xd0] sm:$0xff] }
 0x477   :  { %v753_v45 = vpop.permute.xlu2 %752 }
 0x47f   :  { %v767_v33 = vpop.permute.xlu2 %766 }
 0x486   :  { %v747_v48 = vpop.permute.xlu1 %746  ;;  %v743_v14 = vpop.permute.xlu0 %742 }
 0x487   :  { %v745_v35 = vmax.f32 %v741_v10, %v743_v14  ;;  %v2810_v10 = vld [vmem:[%s3268_s1 + $0xb8] sm:$0xff]  ;;  %v2822_v14 = vld [vmem:[%s3268_s1 + $0x88] sm:$0xff] }
 0x489   :  { %v749_v17 = vmax.f32 %v745_v35, %v747_v48  ;;  %v2816_v48 = vld [vmem:[%s3268_s1 + $0xa0] sm:$0xff]  ;;  %v2828_v35 = vld [vmem:[%s3268_s1 + $0x70] sm:$0xff] }
 0x48b   :  { %v750_v18 = vmax.f32 %v749_v17, %v735_v39  ;;  %v2756_v39 = vld [vmem:[%s3268_s1 + $0x38] sm:$0xff] }
 0x48c   :  { %v2834_v17 = vld [vmem:[%s3268_s1 + $0x58] sm:$0xff] }
 0x48d   :  { %v755_v24 = vmax.f32 %v750_v18, %v753_v45  ;;  %v2840_v45 = vld [vmem:[%s3268_s1 + $0x40] sm:$0xff]  ;;  %v2846_v18 = vld [vmem:[%s3268_s1 + $0x28] sm:$0xff] }
 0x48e   :  { %v761_v23 = vpop.permute.xlu1 %760  ;;  %v757_v38 = vpop.permute.xlu0 %756  ;;  %3369 = vst [vmem:[#allocation13_spill] sm:$0xff] %v2846_v18 }
 0x48f   :  { %v759_v26 = vmax.f32 %v755_v24, %v757_v38  ;;  %v2852_v24 = vld [vmem:[%s3268_s1 + $0x10] sm:$0xff] }
 0x491   :  { %v763_v32 = vmax.f32 %v759_v26, %v761_v23 }
 0x493   :  { %v764_v47 = vmax.f32 %v763_v32, %v736_v42  ;;  %v2774_v42 = vld [vmem:[%s3268_s1 + $0x148] sm:$0xff]  ;;  %s1799_s1 = smov 68  }
 0x495   :  { %v769_v63 = vmax.f32 %v764_v47, %v767_v33 }
 0x496   :  { %v802_v49 = vpop.permute.xlu1 %801  ;;  %v800_v6 = vpop.permute.xlu0 %799 }
 0x497   :  { %1661 = vmatmul.msk.f32.vlgmr.msra.gmra.mxu3 %vm334_vm2, %v769_v63  ;;  %v804_v9 = vsel %vm803_vm5, %v800_v6, %v802_v49 }
 0x498   :  { %1663 = vmatmul.msk.f32.vlgmr.msra.gmra.mxu0 %vm99_vm0, %v804_v9  ;;  %1664 = vmatmul.msk.f32.vlgmr.msrb.gmra.mxu1 %vm99_vm0, %v804_v9 }
 0x499   :  { %968 = vmatpush.msra.mxu3 %v2535_v61 }
 0x49b   :  { %969 = vmatpush.msra.mxu3 %v2695_v12 }
 0x49d   :  { %970 = vmatpush.msra.mxu3 %v2701_v13 }
 0x49f   :  { %1662 = vmatmul.msk.f32.vlgmr.msrb.gmra.mxu3 %vm99_vm0, %v804_v9 }
 0x4a0   :  { %971 = vmatpush.msra.mxu3 %v2708_v16 }
 0x4a2   :  { %972 = vmatpush.msra.mxu3 %v2714_v21 }
 0x4a4   :  { %973 = vmatpush.msra.mxu3 %v2720_v22 }
 0x4a6   :  { %974 = vmatpush.msra.mxu3 %v2726_v25 }
 0x4a8   :  { %975 = vmatpush.msra.mxu3 %v2732_v28 }
 0x4aa   :  { %976 = vmatpush.msra.mxu3 %v2738_v31 }
 0x4ac   :  { %977 = vmatpush.msra.mxu3 %v2744_v34 }
 0x4ae   :  { %978 = vmatpush.msra.mxu3 %v2750_v37 }
 0x4b0   :  { %979 = vmatpush.msra.mxu3 %v2756_v39 }
 0x4b2   :  { %980 = vmatpush.msra.mxu3 %v2762_v40 }
 0x4b4   :  { %981 = vmatpush.msra.mxu3 %v2768_v41 }
 0x4b6   :  { %1127 = vmatpush.msrb.mxu3 %v2774_v42 }
 0x4b8   :  { %1128 = vmatpush.msrb.mxu3 %v2780_v36 }
 0x4ba   :  { %1129 = vmatpush.msrb.mxu3 %v2786_v62 }
 0x4bc   :  { %1130 = vmatpush.msrb.mxu3 %v2792_v51 }
 0x4be   :  { %1131 = vmatpush.msrb.mxu3 %v2798_v59 }
 0x4c0   :  { %1132 = vmatpush.msrb.mxu3 %v2804_v55 }
 0x4c2   :  { %1133 = vmatpush.msrb.mxu3 %v2810_v10 }
 0x4c4   :  { %1134 = vmatpush.msrb.mxu3 %v2816_v48 }
 0x4c6   :  { %1135 = vmatpush.msrb.mxu3 %v2822_v14 }
 0x4c8   :  { %1136 = vmatpush.msrb.mxu3 %v2828_v35 }
 0x4ca   :  { %1137 = vmatpush.msrb.mxu3 %v2834_v17 }
 0x4cc   :  { %1138 = vmatpush.msrb.mxu3 %v2840_v45 }
 0x4ce   :  { %1139 = vmatpush.msrb.mxu3 %v2846_v18 }
 0x4d0   :  { %1140 = vmatpush.msrb.mxu3 %v2852_v24 }
 0x515   :  { %v844_v26 = vpop.f32.mrf.mxu0  ;;  %v864_v18 = vpop.f32.mrf.mxu1 }
 0x516   :  { %v845_v33 = vadd.f32 %v844_v26, %v2229_v50 }
 0x518   :  { %v868_v6 = vmax.f32 %v845_v33, 0.0 }
 0x51a   :  { %v795_v23 = vpop.f32.mrf.mxu3 }
 0x51b   :  { %v2856_v38 = vadd.f32 %v795_v23, %v2567_v7  ;;  %v871_v7 = vmul.f32 %v868_v6, %v2237_v57  ;;  %v865_v23 = vadd.f32 %v864_v18, %v2255_v43  ;;  %v1668_v18 = vld [vmem:[%s3272_s5 + $0xb8] sm:$0xff] }
 0x51c   :  { %929 = vmatpush.msra.mxu2 %v1668_v18 }
 0x51d   :  { %v869_v26 = vmax.f32 %v865_v23, 0.0 }
 0x522   :  { %v824_v32 = vpop.f32.mrf.mxu3 }
 0x523   :  { %v825_v47 = vadd.f32 %v824_v32, %v2221_v46  ;;  %v874_v32 = vadd.f32 %v871_v7, %v2240_v60 }
 0x525   :  { %v867_v63 = vmax.f32 %v825_v47, 0.0  ;;  %v872_v47 = vmul.f32 %v869_v26, %v2262_v53 }
 0x527   :  { %v870_v49 = vmul.f32 %v867_v63, %v2232_v52  ;;  %v875_v33 = vadd.f32 %v872_v47, %v2266_v56  ;;  %v1667_v63 = vld [vmem:[%s3272_s5 + $0xb0] sm:$0xff] }
 0x528   :  { %930 = vmatpush.msra.mxu2 %v1667_v63 }
 0x529   :  { %v873_v9 = vadd.f32 %v870_v49, %v2234_v54  ;;  %v1666_v49 = vld [vmem:[%s3272_s5 + $0xa8] sm:$0xff] }
 0x52a   :  { %931 = vmatpush.msra.mxu2 %v1666_v49 }
 0x52b   :  { %885 = vrot.lane.b32.xlu1 %v873_v9, %s1795_s4  ;;  %881 = vrot.lane.b32.xlu0 %v873_v9, %s1793_s2 }
 0x52c   :  { %877 = vrot.lane.b32.xlu2 %v873_v9, %s1794_s3 }
 0x533   :  { %899 = vrot.lane.b32.xlu1 %v874_v32, %s1795_s4  ;;  %895 = vrot.lane.b32.xlu0 %v874_v32, %s1793_s2 }
 0x534   :  { %891 = vrot.lane.b32.xlu2 %v874_v32, %s1794_s3 }
 0x53b   :  { %940 = vrot.lane.b32.xlu1 %v2214_v44, %s1799_s1  ;;  %938 = vrot.lane.b32.xlu0 %v2588_v27, %s1799_s1  ;;  %v1665_v44 = vld [vmem:[%s3272_s5 + $0xa0] sm:$0xff] }
 0x53c   :  { %905 = vrot.lane.b32.xlu2 %v875_v33, %s1794_s3  ;;  %932 = vmatpush.msra.mxu2 %v1665_v44 }
 0x53e   :  { %948 = vmatpush.msrb.mxu2 %v2607_v29 }
 0x540   :  { %949 = vmatpush.msrb.mxu2 %v2613_v4 }
 0x542   :  { %950 = vmatpush.msrb.mxu2 %v2619_v15 }
 0x544   :  { %951 = vmatpush.msrb.mxu2 %v2625_v19 }
 0x546   :  { %952 = vmatpush.msrb.mxu2 %v2631_v20 }
 0x548   :  { %953 = vmatpush.msrb.mxu2 %v2637_v30 }
 0x54a   :  { %954 = vmatpush.msrb.mxu2 %v2643_v11 }
 0x54c   :  { %955 = vmatpush.msrb.mxu2 %v2649_v58 }
 0x54e   :  { %956 = vmatpush.msrb.mxu2 %v2655_v1 }
 0x550   :  { %957 = vmatpush.msrb.mxu2 %v2661_v0 }
 0x552   :  { %958 = vmatpush.msrb.mxu2 %v2667_v2 }
 0x554   :  { %959 = vmatpush.msrb.mxu2 %v2673_v3 }
 0x556   :  { %960 = vmatpush.msrb.mxu2 %v2679_v5 }
 0x558   :  { %961 = vmatpush.msrb.mxu2 %v2685_v8 }
 0x586   :  { %v878_v6 = vpop.permute.xlu2 %877 }
 0x587   :  { %v880_v7 = vmax.f32 %v873_v9, %v878_v6 }
 0x58e   :  { %v892_v63 = vpop.permute.xlu2 %891 }
 0x596   :  { %v906_v30 = vpop.permute.xlu2 %905 }
 0x59d   :  { %v886_v23 = vpop.permute.xlu1 %885  ;;  %v882_v26 = vpop.permute.xlu0 %881 }
 0x59e   :  { %v884_v47 = vmax.f32 %v880_v7, %v882_v26 }
 0x5a0   :  { %v888_v18 = vmax.f32 %v884_v47, %v886_v23 }
 0x5a2   :  { %v889_v49 = vmax.f32 %v888_v18, %v874_v32 }
 0x5a4   :  { %v894_v44 = vmax.f32 %v889_v49, %v892_v63  ;;  %v2955_v63 = vld [vmem:[%s3267_s0 + $0x8] sm:$0xff]  ;;  %v1676_v49 = vld [vmem:[%s3272_s5 + $0xd8] sm:$0xff]  ;;  %s1803_s0 = smov [#allocation2]  }
 0x5a5   :  { %v900_v1 = vpop.permute.xlu1 %899  ;;  %v896_v58 = vpop.permute.xlu0 %895  ;;  %1068 = vmatpush.msra.mxu1 %v1676_v49  ;;  %s1615_s1 = sshll.u32 %s1803_s0, 4  ;;  %s1616_s1 = int_to_ptr.vmem [resolvable:$true] %s1615_s1 }
 0x5a6   :  { %v898_v0 = vmax.f32 %v894_v44, %v896_v58  ;;  %v1675_v44 = vld [vmem:[%s3272_s5 + $0xd0] sm:$0xff] }
 0x5a7   :  { %1069 = vmatpush.msra.mxu1 %v1675_v44 }
 0x5a8   :  { %v902_v11 = vmax.f32 %v898_v0, %v900_v1 }
 0x5aa   :  { %v903_v2 = vmax.f32 %v902_v11, %v875_v33 }
 0x5ac   :  { %v908_v3 = vmax.f32 %v903_v2, %v906_v30 }
 0x5ad   :  { %v941_v5 = vpop.permute.xlu1 %940  ;;  %v939_v20 = vpop.permute.xlu0 %938 }
 0x5ae   :  { %1669 = vmatmul.msk.f32.vlgmr.msra.gmra.mxu2 %vm334_vm2, %v908_v3  ;;  %v943_v9 = vsel %vm942_vm6, %v939_v20, %v941_v5  ;;  %v3370_v20 = vld [vmem:[#allocation13_spill] sm:$0xff] }
 0x5af   :  { %1671 = vmatmul.msk.f32.vlgmr.msra.gmra.mxu3 %vm99_vm0, %v943_v9  ;;  %1672 = vmatmul.msk.f32.vlgmr.msrb.gmra.mxu0 %vm99_vm0, %v943_v9 }
 0x5b0   :  { %1107 = vmatpush.msra.mxu2 %v2535_v61 }
 0x5b2   :  { %1108 = vmatpush.msra.mxu2 %v2695_v12 }
 0x5b4   :  { %1109 = vmatpush.msra.mxu2 %v2701_v13 }
 0x5b6   :  { %1670 = vmatmul.msk.f32.vlgmr.msrb.gmra.mxu2 %vm99_vm0, %v943_v9  ;;  %v1674_v9 = vld [vmem:[%s3272_s5 + $0xc8] sm:$0xff] }
 0x5b7   :  { %1110 = vmatpush.msra.mxu2 %v2708_v16  ;;  %1070 = vmatpush.msra.mxu1 %v1674_v9 }
 0x5b9   :  { %1111 = vmatpush.msra.mxu2 %v2714_v21 }
 0x5bb   :  { %1112 = vmatpush.msra.mxu2 %v2720_v22 }
 0x5bd   :  { %1113 = vmatpush.msra.mxu2 %v2726_v25 }
 0x5bf   :  { %1114 = vmatpush.msra.mxu2 %v2732_v28 }
 0x5c1   :  { %1115 = vmatpush.msra.mxu2 %v2738_v31 }
 0x5c3   :  { %1116 = vmatpush.msra.mxu2 %v2744_v34 }
 0x5c5   :  { %1117 = vmatpush.msra.mxu2 %v2750_v37 }
 0x5c7   :  { %1118 = vmatpush.msra.mxu2 %v2756_v39 }
 0x5c9   :  { %1119 = vmatpush.msra.mxu2 %v2762_v40 }
 0x5cb   :  { %1120 = vmatpush.msra.mxu2 %v2768_v41 }
 0x5cd   :  { %1266 = vmatpush.msrb.mxu2 %v2774_v42 }
 0x5cf   :  { %1267 = vmatpush.msrb.mxu2 %v2780_v36 }
 0x5d1   :  { %1268 = vmatpush.msrb.mxu2 %v2786_v62 }
 0x5d3   :  { %1269 = vmatpush.msrb.mxu2 %v2792_v51 }
 0x5d5   :  { %1270 = vmatpush.msrb.mxu2 %v2798_v59 }
 0x5d7   :  { %1271 = vmatpush.msrb.mxu2 %v2804_v55 }
 0x5d9   :  { %1272 = vmatpush.msrb.mxu2 %v2810_v10 }
 0x5db   :  { %1273 = vmatpush.msrb.mxu2 %v2816_v48 }
 0x5dd   :  { %1274 = vmatpush.msrb.mxu2 %v2822_v14 }
 0x5df   :  { %1275 = vmatpush.msrb.mxu2 %v2828_v35 }
 0x5e1   :  { %1276 = vmatpush.msrb.mxu2 %v2834_v17 }
 0x5e3   :  { %1277 = vmatpush.msrb.mxu2 %v2840_v45 }
 0x5e5   :  { %1278 = vmatpush.msrb.mxu2 %v3370_v20 }
 0x5e7   :  { %1279 = vmatpush.msrb.mxu2 %v2852_v24 }
 0x62c   :  { %v1003_v6 = vpop.f32.mrf.mxu0 }
 0x62d   :  { %v1004_v7 = vadd.f32 %v1003_v6, %v2255_v43  ;;  %v3378_v6 = vld [vmem:[#allocation17_spill] sm:$0xff] }
 0x62f   :  { %v1008_v26 = vmax.f32 %v1004_v7, 0.0 }
 0x631   :  { %v934_v30 = vpop.f32.mrf.mxu2  ;;  %v1011_v47 = vmul.f32 %v1008_v26, %v2262_v53 }
 0x632   :  { %v2935_v11 = vadd.f32 %v934_v30, %v2856_v38  ;;  %v983_v1 = vpop.f32.mrf.mxu3  ;;  %v1673_v30 = vld [vmem:[%s3272_s5 + $0xc0] sm:$0xff] }
 0x633   :  { %v984_v3 = vadd.f32 %v983_v1, %v2229_v50  ;;  %v1014_v18 = vadd.f32 %v1011_v47, %v2266_v56  ;;  %1071 = vmatpush.msra.mxu1 %v1673_v30  ;;  %v3372_v1 = vld [vmem:[#allocation8_spill] sm:$0xff] }
 0x635   :  { %v1007_v33 = vmax.f32 %v984_v3, 0.0  ;;  %1087 = vmatpush.msrb.mxu1 %v2607_v29  ;;  %v3375_v3 = vld [vmem:[#allocation12_spill] sm:$0xff] }
 0x637   :  { %v1010_v38 = vmul.f32 %v1007_v33, %v2237_v57  ;;  %1088 = vmatpush.msrb.mxu1 %v2613_v4  ;;  %v3377_v33 = vld [vmem:[#allocation16_spill] sm:$0xff] }
 0x639   :  { %v963_v58 = vpop.f32.mrf.mxu2  ;;  %v1013_v23 = vadd.f32 %v1010_v38, %v2240_v60  ;;  %1089 = vmatpush.msrb.mxu1 %v2619_v15  ;;  %v3379_v38 = vld [vmem:[#allocation11_spill] sm:$0xff] }
 0x63a   :  { %v964_v0 = vadd.f32 %v963_v58, %v2221_v46  ;;  %v3371_v58 = vld [vmem:[#allocation7_spill] sm:$0xff] }
 0x63b   :  { %1090 = vmatpush.msrb.mxu1 %v2625_v19 }
 0x63c   :  { %v1006_v2 = vmax.f32 %v964_v0, 0.0  ;;  %v3373_v0 = vld [vmem:[#allocation9_spill] sm:$0xff] }
 0x63d   :  { %1091 = vmatpush.msrb.mxu1 %v3371_v58 }
 0x63e   :  { %v1009_v5 = vmul.f32 %v1006_v2, %v2232_v52  ;;  %v3374_v2 = vld [vmem:[#allocation10_spill] sm:$0xff] }
 0x63f   :  { %1092 = vmatpush.msrb.mxu1 %v3372_v1 }
 0x640   :  { %v1012_v32 = vadd.f32 %v1009_v5, %v2234_v54  ;;  %v3376_v5 = vld [vmem:[#allocation14_spill] sm:$0xff] }
 0x641   :  { %1093 = vmatpush.msrb.mxu1 %v3373_v0 }
 0x642   :  { %1024 = vrot.lane.b32.xlu1 %v1012_v32, %s1795_s4  ;;  %1020 = vrot.lane.b32.xlu0 %v1012_v32, %s1793_s2 }
 0x643   :  { %1016 = vrot.lane.b32.xlu2 %v1012_v32, %s1794_s3  ;;  %1094 = vmatpush.msrb.mxu1 %v3374_v2 }
 0x645   :  { %1095 = vmatpush.msrb.mxu1 %v3375_v3 }
 0x647   :  { %1096 = vmatpush.msrb.mxu1 %v3376_v5 }
 0x649   :  { %1097 = vmatpush.msrb.mxu1 %v3377_v33 }
 0x64a   :  { %1038 = vrot.lane.b32.xlu1 %v1013_v23, %s1795_s4  ;;  %1034 = vrot.lane.b32.xlu0 %v1013_v23, %s1793_s2 }
 0x64b   :  { %1030 = vrot.lane.b32.xlu2 %v1013_v23, %s1794_s3  ;;  %1098 = vmatpush.msrb.mxu1 %v3378_v6 }
 0x64d   :  { %1099 = vmatpush.msrb.mxu1 %v3379_v38 }
 0x64f   :  { %1100 = vmatpush.msrb.mxu1 %v2685_v8 }
 0x652   :  { %1079 = vrot.lane.b32.xlu1 %v2955_v63, %s1800_s22  ;;  %1077 = vrot.lane.b32.xlu0 %v2588_v27, %s1800_s22 }
 0x653   :  { %1044 = vrot.lane.b32.xlu2 %v1014_v18, %s1794_s3 }
 0x69d   :  { %v1017_v7 = vpop.permute.xlu2 %1016 }
 0x69e   :  { %v1019_v26 = vmax.f32 %v1012_v32, %v1017_v7  ;;  %v3387_v7 = vld [vmem:[#allocation14_spill] sm:$0xff] }
 0x6a5   :  { %v1031_v30 = vpop.permute.xlu2 %1030 }
 0x6ad   :  { %v1045_v19 = vpop.permute.xlu2 %1044 }
 0x6b4   :  { %v1025_v47 = vpop.permute.xlu1 %1024  ;;  %v1021_v49 = vpop.permute.xlu0 %1020 }
 0x6b5   :  { %v1023_v44 = vmax.f32 %v1019_v26, %v1021_v49  ;;  %v3388_v26 = vld [vmem:[#allocation16_spill] sm:$0xff]  ;;  %v3390_v49 = vld [vmem:[#allocation11_spill] sm:$0xff] }
 0x6b7   :  { %v1027_v9 = vmax.f32 %v1023_v44, %v1025_v47  ;;  %v3389_v47 = vld [vmem:[#allocation17_spill] sm:$0xff] }
 0x6b9   :  { %v1028_v2 = vmax.f32 %v1027_v9, %v1013_v23  ;;  %v1684_v23 = vld [vmem:[%s3272_s5 + $0xf8] sm:$0xff] }
 0x6ba   :  { %1207 = vmatpush.msra.mxu0 %v1684_v23 }
 0x6bb   :  { %v1033_v0 = vmax.f32 %v1028_v2, %v1031_v30  ;;  %v3381_v2 = vld [vmem:[#allocation6_spill] sm:$0xff] }
 0x6bc   :  { %v1039_v3 = vpop.permute.xlu1 %1038  ;;  %v1035_v1 = vpop.permute.xlu0 %1034 }
 0x6bd   :  { %v1037_v5 = vmax.f32 %v1033_v0, %v1035_v1  ;;  %v1681_v1 = vld [vmem:[%s3272_s5 + $0xe0] sm:$0xff]  ;;  %v3380_v0 = vld [vmem:[#allocation5_spill] sm:$0xff] }
 0x6bf   :  { %v1041_v58 = vmax.f32 %v1037_v5, %v1039_v3  ;;  %v3382_v3 = vld [vmem:[#allocation7_spill] sm:$0xff]  ;;  %v3383_v5 = vld [vmem:[#allocation8_spill] sm:$0xff] }
 0x6c1   :  { %v1042_v33 = vmax.f32 %v1041_v58, %v1014_v18  ;;  %v1683_v18 = vld [vmem:[%s3272_s5 + $0xf0] sm:$0xff]  ;;  %v1682_v58 = vld [vmem:[%s3272_s5 + $0xe8] sm:$0xff] }
 0x6c2   :  { %1208 = vmatpush.msra.mxu0 %v1683_v18  ;;  %v1692_v18 = vld [vmem:[%s3272_s5 + $0x118] sm:$0xff] }
 0x6c3   :  { %v1047_v6 = vmax.f32 %v1042_v33, %v1045_v19  ;;  %v3384_v33 = vld [vmem:[#allocation9_spill] sm:$0xff]  ;;  %1346 = vmatpush.msra.mxu3 %v1692_v18 }
 0x6c4   :  { %v1080_v38 = vpop.permute.xlu1 %1079  ;;  %v1078_v15 = vpop.permute.xlu0 %1077  ;;  %1209 = vmatpush.msra.mxu0 %v1682_v58  ;;  %v1691_v58 = vld [vmem:[%s3272_s5 + $0x110] sm:$0xff] }
 0x6c5   :  { %1677 = vmatmul.msk.f32.vlgmr.msra.gmra.mxu1 %vm334_vm2, %v1047_v6  ;;  %v1082_v32 = vsel %vm1081_vm7, %v1078_v15, %v1080_v38  ;;  %v3385_v6 = vld [vmem:[#allocation10_spill] sm:$0xff]  ;;  %v3386_v38 = vld [vmem:[#allocation12_spill] sm:$0xff]  ;;  %1347 = vmatpush.msra.mxu3 %v1691_v58 }
 0x6c6   :  { %1679 = vmatmul.msk.f32.vlgmr.msra.gmra.mxu2 %vm99_vm0, %v1082_v32  ;;  %1680 = vmatmul.msk.f32.vlgmr.msrb.gmra.mxu3 %vm99_vm0, %v1082_v32 }
 0x6c7   :  { %1246 = vmatpush.msra.mxu1 %v2535_v61  ;;  %1210 = vmatpush.msra.mxu0 %v1681_v1  ;;  %v1690_v1 = vld [vmem:[%s3272_s5 + $0x108] sm:$0xff] }
 0x6c8   :  { %1348 = vmatpush.msra.mxu3 %v1690_v1 }
 0x6c9   :  { %1247 = vmatpush.msra.mxu1 %v2695_v12  ;;  %1226 = vmatpush.msrb.mxu0 %v2607_v29 }
 0x6cb   :  { %1248 = vmatpush.msra.mxu1 %v2701_v13  ;;  %1227 = vmatpush.msrb.mxu0 %v2613_v4 }
 0x6cd   :  { %1678 = vmatmul.msk.f32.vlgmr.msrb.gmra.mxu1 %vm99_vm0, %v1082_v32  ;;  %1228 = vmatpush.msrb.mxu0 %v3380_v0 }
 0x6ce   :  { %1249 = vmatpush.msra.mxu1 %v2708_v16 }
 0x6cf   :  { %1229 = vmatpush.msrb.mxu0 %v3381_v2 }
 0x6d0   :  { %1250 = vmatpush.msra.mxu1 %v2714_v21 }
 0x6d1   :  { %1230 = vmatpush.msrb.mxu0 %v3382_v3 }
 0x6d2   :  { %1251 = vmatpush.msra.mxu1 %v2720_v22 }
 0x6d3   :  { %1231 = vmatpush.msrb.mxu0 %v3383_v5 }
 0x6d4   :  { %1252 = vmatpush.msra.mxu1 %v2726_v25 }
 0x6d5   :  { %1232 = vmatpush.msrb.mxu0 %v3384_v33 }
 0x6d6   :  { %1253 = vmatpush.msra.mxu1 %v2732_v28 }
 0x6d7   :  { %1233 = vmatpush.msrb.mxu0 %v3385_v6 }
 0x6d8   :  { %1254 = vmatpush.msra.mxu1 %v2738_v31 }
 0x6d9   :  { %1234 = vmatpush.msrb.mxu0 %v3386_v38 }
 0x6da   :  { %1255 = vmatpush.msra.mxu1 %v2744_v34 }
 0x6db   :  { %1235 = vmatpush.msrb.mxu0 %v3387_v7 }
 0x6dc   :  { %1256 = vmatpush.msra.mxu1 %v2750_v37 }
 0x6dd   :  { %1236 = vmatpush.msrb.mxu0 %v3388_v26 }
 0x6de   :  { %1257 = vmatpush.msra.mxu1 %v2756_v39 }
 0x6df   :  { %1237 = vmatpush.msrb.mxu0 %v3389_v47 }
 0x6e0   :  { %1258 = vmatpush.msra.mxu1 %v2762_v40 }
 0x6e1   :  { %1238 = vmatpush.msrb.mxu0 %v3390_v49 }
 0x6e2   :  { %1259 = vmatpush.msra.mxu1 %v2768_v41 }
 0x6e3   :  { %1239 = vmatpush.msrb.mxu0 %v2685_v8 }
 0x6e4   :  { %1405 = vmatpush.msrb.mxu1 %v2774_v42 }
 0x6e6   :  { %1406 = vmatpush.msrb.mxu1 %v2780_v36 }
 0x6e8   :  { %1407 = vmatpush.msrb.mxu1 %v2786_v62 }
 0x6ea   :  { %1408 = vmatpush.msrb.mxu1 %v2792_v51 }
 0x6ec   :  { %1409 = vmatpush.msrb.mxu1 %v2798_v59 }
 0x6ee   :  { %1410 = vmatpush.msrb.mxu1 %v2804_v55 }
 0x6f0   :  { %1411 = vmatpush.msrb.mxu1 %v2810_v10 }
 0x6f2   :  { %1412 = vmatpush.msrb.mxu1 %v2816_v48 }
 0x6f4   :  { %1413 = vmatpush.msrb.mxu1 %v2822_v14 }
 0x6f6   :  { %1414 = vmatpush.msrb.mxu1 %v2828_v35 }
 0x6f8   :  { %1415 = vmatpush.msrb.mxu1 %v2834_v17 }
 0x6fa   :  { %1416 = vmatpush.msrb.mxu1 %v2840_v45 }
 0x6fc   :  { %1417 = vmatpush.msrb.mxu1 %v3370_v20 }
 0x6fe   :  { %1418 = vmatpush.msrb.mxu1 %v2852_v24 }
 0x742   :  { %v1073_v15 = vpop.f32.mrf.mxu1 }
 0x743   :  { %v3019_v19 = vadd.f32 %v1073_v15, %v2935_v11 }
 0x749   :  { %v1122_v36 = vpop.f32.mrf.mxu2  ;;  %v1142_v14 = vpop.f32.mrf.mxu3 }
 0x74a   :  { %v1102_v42 = vpop.f32.mrf.mxu1  ;;  %v1123_v59 = vadd.f32 %v1122_v36, %v2229_v50  ;;  %v1143_v17 = vadd.f32 %v1142_v14, %v2255_v43 }
 0x74b   :  { %v1103_v62 = vadd.f32 %v1102_v42, %v2221_v46 }
 0x74c   :  { %v1146_v48 = vmax.f32 %v1123_v59, 0.0  ;;  %v1147_v24 = vmax.f32 %v1143_v17, 0.0 }
 0x74d   :  { %v1145_v51 = vmax.f32 %v1103_v62, 0.0 }
 0x74e   :  { %v1149_v35 = vmul.f32 %v1146_v48, %v2237_v57  ;;  %v1150_v20 = vmul.f32 %v1147_v24, %v2262_v53 }
 0x74f   :  { %v1148_v55 = vmul.f32 %v1145_v51, %v2232_v52 }
 0x750   :  { %v1152_v45 = vadd.f32 %v1149_v35, %v2240_v60  ;;  %v1153_v11 = vadd.f32 %v1150_v20, %v2266_v56 }
 0x751   :  { %v1151_v10 = vadd.f32 %v1148_v55, %v2234_v54 }
 0x753   :  { %1163 = vrot.lane.b32.xlu1 %v1151_v10, %s1795_s4  ;;  %1159 = vrot.lane.b32.xlu0 %v1151_v10, %s1793_s2 }
 0x754   :  { %1155 = vrot.lane.b32.xlu2 %v1151_v10, %s1794_s3 }
 0x75b   :  { %1177 = vrot.lane.b32.xlu1 %v1152_v45, %s1795_s4  ;;  %1173 = vrot.lane.b32.xlu0 %v1152_v45, %s1793_s2 }
 0x75c   :  { %1169 = vrot.lane.b32.xlu2 %v1152_v45, %s1794_s3 }
 0x763   :  { %1218 = vrot.lane.b32.xlu1 %v2955_v63, %s1801_s29  ;;  %1216 = vrot.lane.b32.xlu0 %v2588_v27, %s1801_s29 }
 0x764   :  { %1183 = vrot.lane.b32.xlu2 %v1153_v11, %s1794_s3 }
 0x7ae   :  { %v1156_v44 = vpop.permute.xlu2 %1155 }
 0x7af   :  { %v1158_v9 = vmax.f32 %v1151_v10, %v1156_v44 }
 0x7b6   :  { %v1170_v36 = vpop.permute.xlu2 %1169 }
 0x7be   :  { %v1184_v17 = vpop.permute.xlu2 %1183 }
 0x7c5   :  { %v1164_v30 = vpop.permute.xlu1 %1163  ;;  %v1160_v32 = vpop.permute.xlu0 %1159 }
 0x7c6   :  { %v1162_v15 = vmax.f32 %v1158_v9, %v1160_v32 }
 0x7c8   :  { %v1166_v42 = vmax.f32 %v1162_v15, %v1164_v30 }
 0x7ca   :  { %v1167_v62 = vmax.f32 %v1166_v42, %v1152_v45 }
 0x7cc   :  { %v1172_v51 = vmax.f32 %v1167_v62, %v1170_v36 }
 0x7cd   :  { %v1178_v59 = vpop.permute.xlu1 %1177  ;;  %v1174_v55 = vpop.permute.xlu0 %1173 }
 0x7ce   :  { %v1176_v48 = vmax.f32 %v1172_v51, %v1174_v55 }
 0x7d0   :  { %v1180_v14 = vmax.f32 %v1176_v48, %v1178_v59 }
 0x7d2   :  { %v1181_v35 = vmax.f32 %v1180_v14, %v1153_v11 }
 0x7d4   :  { %v1186_v24 = vmax.f32 %v1181_v35, %v1184_v17 }
 0x7d5   :  { %v1219_v20 = vpop.permute.xlu1 %1218  ;;  %v1217_v23 = vpop.permute.xlu0 %1216 }
 0x7d6   :  { %1685 = vmatmul.msk.f32.vlgmr.msra.gmra.mxu0 %vm334_vm2, %v1186_v24  ;;  %v1221_v10 = vsel %vm1220_vm8, %v1217_v23, %v1219_v20  ;;  %v1514_v23 = vld [vmem:[%s3274_s7 + $0x70] sm:$0xff] }
 0x7d7   :  { %1687 = vmatmul.msk.f32.vlgmr.msra.gmra.mxu1 %vm99_vm0, %v1221_v10  ;;  %1688 = vmatmul.msk.f32.vlgmr.msrb.gmra.mxu2 %vm99_vm0, %v1221_v10 }
 0x7d8   :  { %1385 = vmatpush.msra.mxu0 %v2535_v61 }
 0x7da   :  { %1386 = vmatpush.msra.mxu0 %v2695_v12 }
 0x7dc   :  { %1387 = vmatpush.msra.mxu0 %v2701_v13 }
 0x7de   :  { %1686 = vmatmul.msk.f32.vlgmr.msrb.gmra.mxu0 %vm99_vm0, %v1221_v10  ;;  %v1513_v10 = vld [vmem:[%s3274_s7 + $0x68] sm:$0xff] }
 0x7df   :  { %1388 = vmatpush.msra.mxu0 %v2708_v16 }
 0x7e1   :  { %1389 = vmatpush.msra.mxu0 %v2714_v21 }
 0x7e3   :  { %1390 = vmatpush.msra.mxu0 %v2720_v22 }
 0x7e5   :  { %1391 = vmatpush.msra.mxu0 %v2726_v25 }
 0x7e7   :  { %1392 = vmatpush.msra.mxu0 %v2732_v28 }
 0x7e9   :  { %1393 = vmatpush.msra.mxu0 %v2738_v31 }
 0x7eb   :  { %1394 = vmatpush.msra.mxu0 %v2744_v34 }
 0x7ed   :  { %1395 = vmatpush.msra.mxu0 %v2750_v37 }
 0x7ef   :  { %1396 = vmatpush.msra.mxu0 %v2756_v39 }
 0x7f1   :  { %1397 = vmatpush.msra.mxu0 %v2762_v40 }
 0x7f3   :  { %1398 = vmatpush.msra.mxu0 %v2768_v41 }
 0x853   :  { %v1212_v61 = vpop.f32.mrf.mxu0 }
 0x854   :  { %v3084_v12 = vadd.f32 %v1212_v61, %v3019_v19  ;;  %v1261_v16 = vpop.f32.mrf.mxu1  ;;  %v1512_v61 = vld [vmem:[%s3274_s7 + $0x60] sm:$0xff] }
 0x855   :  { %v1262_v25 = vadd.f32 %v1261_v16, %v2229_v50 }
 0x857   :  { %v1285_v34 = vmax.f32 %v1262_v25, 0.0 }
 0x859   :  { %v1288_v39 = vmul.f32 %v1285_v34, %v2237_v57 }
 0x85a   :  { %v1281_v37 = vpop.f32.mrf.mxu2 }
 0x85b   :  { %v1241_v13 = vpop.f32.mrf.mxu0  ;;  %v1282_v40 = vadd.f32 %v1281_v37, %v2255_v43  ;;  %v1291_v41 = vadd.f32 %v1288_v39, %v2240_v60  ;;  %v1506_v39 = vld [vmem:[%s3274_s7 + $0x30] sm:$0xff] }
 0x85c   :  { %v1242_v21 = vadd.f32 %v1241_v13, %v2221_v46  ;;  %v1510_v13 = vld [vmem:[%s3274_s7 + $0x50] sm:$0xff] }
 0x85d   :  { %v1286_v19 = vmax.f32 %v1282_v40, 0.0 }
 0x85e   :  { %v1284_v22 = vmax.f32 %v1242_v21, 0.0  ;;  %v1509_v21 = vld [vmem:[%s3274_s7 + $0x48] sm:$0xff] }
 0x85f   :  { %v1289_v45 = vmul.f32 %v1286_v19, %v2262_v53 }
 0x860   :  { %v1287_v28 = vmul.f32 %v1284_v22, %v2232_v52  ;;  %v1508_v22 = vld [vmem:[%s3274_s7 + $0x40] sm:$0xff] }
 0x861   :  { %v1292_v11 = vadd.f32 %v1289_v45, %v2266_v56 }
 0x862   :  { %v1290_v31 = vadd.f32 %v1287_v28, %v2234_v54  ;;  %v1507_v28 = vld [vmem:[%s3274_s7 + $0x38] sm:$0xff] }
 0x864   :  { %1302 = vrot.lane.b32.xlu1 %v1290_v31, %s1795_s4  ;;  %1298 = vrot.lane.b32.xlu0 %v1290_v31, %s1793_s2 }
 0x865   :  { %1294 = vrot.lane.b32.xlu2 %v1290_v31, %s1794_s3 }
 0x86c   :  { %1316 = vrot.lane.b32.xlu1 %v1291_v41, %s1795_s4  ;;  %1312 = vrot.lane.b32.xlu0 %v1291_v41, %s1793_s2 }
 0x86d   :  { %1308 = vrot.lane.b32.xlu2 %v1291_v41, %s1794_s3 }
 0x874   :  { %1357 = vrot.lane.b32.xlu1 %v2955_v63, %s1802_s21  ;;  %1355 = vrot.lane.b32.xlu0 %v2588_v27, %s1802_s21  ;;  %v1689_v27 = vld [vmem:[%s3272_s5 + $0x100] sm:$0xff] }
 0x875   :  { %1322 = vrot.lane.b32.xlu2 %v1292_v11, %s1794_s3  ;;  %1349 = vmatpush.msra.mxu3 %v1689_v27 }
 0x877   :  { %1365 = vmatpush.msrb.mxu3 %v2607_v29 }
 0x879   :  { %1366 = vmatpush.msrb.mxu3 %v2613_v4 }
 0x87b   :  { %1367 = vmatpush.msrb.mxu3 %v3380_v0 }
 0x87d   :  { %1368 = vmatpush.msrb.mxu3 %v3381_v2 }
 0x87f   :  { %1369 = vmatpush.msrb.mxu3 %v3382_v3 }
 0x881   :  { %1370 = vmatpush.msrb.mxu3 %v3383_v5 }
 0x883   :  { %1371 = vmatpush.msrb.mxu3 %v3384_v33 }
 0x885   :  { %1372 = vmatpush.msrb.mxu3 %v3385_v6 }
 0x887   :  { %1373 = vmatpush.msrb.mxu3 %v3386_v38 }
 0x889   :  { %1374 = vmatpush.msrb.mxu3 %v3387_v7 }
 0x88b   :  { %1375 = vmatpush.msrb.mxu3 %v3388_v26 }
 0x88d   :  { %1376 = vmatpush.msrb.mxu3 %v3389_v47 }
 0x88f   :  { %1377 = vmatpush.msrb.mxu3 %v3390_v49 }
 0x891   :  { %1378 = vmatpush.msrb.mxu3 %v2685_v8 }
 0x8bf   :  { %v1295_v29 = vpop.permute.xlu2 %1294 }
 0x8c0   :  { %v1297_v4 = vmax.f32 %v1290_v31, %v1295_v29 }
 0x8c7   :  { %v1309_v5 = vpop.permute.xlu2 %1308 }
 0x8cf   :  { %v1323_v30 = vpop.permute.xlu2 %1322 }
 0x8d6   :  { %v1303_v63 = vpop.permute.xlu1 %1302  ;;  %v1299_v0 = vpop.permute.xlu0 %1298 }
 0x8d7   :  { %v1301_v2 = vmax.f32 %v1297_v4, %v1299_v0 }
 0x8d9   :  { %v1305_v3 = vmax.f32 %v1301_v2, %v1303_v63  ;;  %v1503_v2 = vld [vmem:[%s3274_s7 + $0x18] sm:$0xff] }
 0x8db   :  { %v1306_v33 = vmax.f32 %v1305_v3, %v1291_v41  ;;  %v1505_v41 = vld [vmem:[%s3274_s7 + $0x28] sm:$0xff]  ;;  %v1502_v3 = vld [vmem:[%s3274_s7 + $0x10] sm:$0xff] }
 0x8dd   :  { %v1311_v6 = vmax.f32 %v1306_v33, %v1309_v5  ;;  %v1501_v5 = vld [vmem:[%s3274_s7 + $0x8] sm:$0xff]  ;;  %v1500_v33 = vld [vmem:[%s3274_s7] sm:$0xff] }
 0x8de   :  { %v1317_v38 = vpop.permute.xlu1 %1316  ;;  %v1313_v44 = vpop.permute.xlu0 %1312 }
 0x8df   :  { %v1315_v7 = vmax.f32 %v1311_v6, %v1313_v44  ;;  %v1548_v6 = vld [vmem:[%s3276_s9 + $0x38] sm:$0xff]  ;;  %v1546_v44 = vld [vmem:[%s3276_s9 + $0x28] sm:$0xff] }
 0x8e1   :  { %v1319_v9 = vmax.f32 %v1315_v7, %v1317_v38  ;;  %v1547_v38 = vld [vmem:[%s3276_s9 + $0x30] sm:$0xff]  ;;  %v1545_v7 = vld [vmem:[%s3276_s9 + $0x20] sm:$0xff] }
 0x8e3   :  { %v1320_v26 = vmax.f32 %v1319_v9, %v1292_v11  ;;  %v1504_v11 = vld [vmem:[%s3274_s7 + $0x20] sm:$0xff]  ;;  %v1544_v9 = vld [vmem:[%s3276_s9 + $0x18] sm:$0xff] }
 0x8e5   :  { %v1325_v47 = vmax.f32 %v1320_v26, %v1323_v30  ;;  %v1717_v26 = vld [vmem:[%s3273_s6] ss:$0 sm:$0xff] }
 0x8e6   :  { %v1358_v49 = vpop.permute.xlu1 %1357  ;;  %v1356_v32 = vpop.permute.xlu0 %1355 }
 0x8e7   :  { %1693 = vmatmul.msk.f32.vlgmr.msra.gmra.mxu3 %vm334_vm2, %v1325_v47  ;;  %v1360_v8 = vsel %vm1359_vm9, %v1356_v32, %v1358_v49 }
 0x8e8   :  { %1695 = vmatmul.msk.f32.vlgmr.msra.gmra.mxu0 %vm99_vm0, %v1360_v8  ;;  %1696 = vmatmul.msk.f32.vlgmr.msrb.gmra.mxu1 %vm99_vm0, %v1360_v8 }
 0x8e9   :  { %1565 = vmatpush.msra.mxu3 %v1548_v6 }
 0x8eb   :  { %1566 = vmatpush.msra.mxu3 %v1547_v38 }
 0x8ed   :  { %1567 = vmatpush.msra.mxu3 %v1546_v44 }
 0x8ef   :  { %1694 = vmatmul.msk.f32.vlgmr.msrb.gmra.mxu3 %vm99_vm0, %v1360_v8  ;;  %v1543_v8 = vld [vmem:[%s3276_s9 + $0x10] sm:$0xff] }
 0x8f0   :  { %1568 = vmatpush.msra.mxu3 %v1545_v7 }
 0x8f2   :  { %1569 = vmatpush.msra.mxu3 %v1544_v9 }
 0x8f4   :  { %1570 = vmatpush.msra.mxu3 %v1543_v8 }
 0x965   :  { %v1400_v36 = vpop.f32.mrf.mxu0  ;;  %v1420_v17 = vpop.f32.mrf.mxu1 }
 0x966   :  { %v1401_v59 = vadd.f32 %v1400_v36, %v2229_v50  ;;  %v1421_v20 = vadd.f32 %v1420_v17, %v2255_v43  ;;  %v1698_v43 = vld [vmem:[%s3272_s5 + $0x128] sm:$0xff]  ;;  %v1541_v36 = vld [vmem:[%s3276_s9] sm:$0xff] }
 0x967   :  { %v1719_v17 = vld [vmem:[%s3277_s10] ss:$0 sm:$0xff] }
 0x968   :  { %v1424_v14 = vmax.f32 %v1401_v59, 0.0  ;;  %v1425_v50 = vmax.f32 %v1421_v20, 0.0 }
 0x96a   :  { %v1351_v15 = vpop.f32.mrf.mxu3  ;;  %v1427_v24 = vmul.f32 %v1424_v14, %v2237_v57  ;;  %v1700_v57 = vld [vmem:[%s3272_s5 + $0x138] sm:$0xff]  ;;  %v1579_v14 = vld [vmem:[%s3278_s11 + $0x8] sm:$0xff] }
 0x96b   :  { %v3135_v42 = vadd.f32 %v1351_v15, %v3084_v12  ;;  %1485 = vmatpush.msra.mxu2 %v1700_v57  ;;  %v1511_v12 = vld [vmem:[%s3274_s7 + $0x58] sm:$0xff]  ;;  %v1542_v15 = vld [vmem:[%s3276_s9 + $0x8] sm:$0xff] }
 0x96c   :  { %1571 = vmatpush.msra.mxu3 %v1542_v15 }
 0x96e   :  { %1572 = vmatpush.msra.mxu3 %v1541_v36 }
 0x972   :  { %v1380_v62 = vpop.f32.mrf.mxu3 }
 0x973   :  { %v1381_v51 = vadd.f32 %v1380_v62, %v2221_v46  ;;  %v1430_v46 = vadd.f32 %v1427_v24, %v2240_v60  ;;  %v1699_v60 = vld [vmem:[%s3272_s5 + $0x130] sm:$0xff] }
 0x974   :  { %1486 = vmatpush.msra.mxu2 %v1699_v60  ;;  %v1580_v62 = vld [vmem:[%s3278_s11 + $0x10] sm:$0xff] }
 0x975   :  { %v1423_v55 = vmax.f32 %v1381_v51, 0.0  ;;  %v1718_v51 = vld [vmem:[%s3275_s8] ss:$0 sm:$0xff] }
 0x976   :  { %1487 = vmatpush.msra.mxu2 %v1698_v43 }
 0x977   :  { %v1426_v48 = vmul.f32 %v1423_v55, %v2232_v52  ;;  %v1428_v52 = vmul.f32 %v1425_v50, %v2262_v53  ;;  %v1697_v53 = vld [vmem:[%s3272_s5 + $0x120] sm:$0xff] }
 0x978   :  { %1488 = vmatpush.msra.mxu2 %v1697_v53  ;;  %v1720_v50 = vld [vmem:[%s3279_s12] ss:$0 sm:$0xff] }
 0x979   :  { %v1429_v35 = vadd.f32 %v1426_v48, %v2234_v54  ;;  %v1431_v54 = vadd.f32 %v1428_v52, %v2266_v56  ;;  %v1515_v56 = vld [vmem:[%s3274_s7 + $0x78] sm:$0xff] }
 0x97a   :  { %1520 = vmatpush.msrb.mxu2 %v1515_v56 }
 0x97b   :  { %1441 = vrot.lane.b32.xlu1 %v1429_v35, %s1795_s4  ;;  %1437 = vrot.lane.b32.xlu0 %v1429_v35, %s1793_s2 }
 0x97c   :  { %1433 = vrot.lane.b32.xlu2 %v1429_v35, %s1794_s3  ;;  %1521 = vmatpush.msrb.mxu2 %v1514_v23 }
 0x97e   :  { %1522 = vmatpush.msrb.mxu2 %v1513_v10 }
 0x980   :  { %1523 = vmatpush.msrb.mxu2 %v1512_v61 }
 0x982   :  { %1524 = vmatpush.msrb.mxu2 %v1511_v12 }
 0x983   :  { %1455 = vrot.lane.b32.xlu1 %v1430_v46, %s1795_s4  ;;  %1451 = vrot.lane.b32.xlu0 %v1430_v46, %s1793_s2 }
 0x984   :  { %1447 = vrot.lane.b32.xlu2 %v1430_v46, %s1794_s3  ;;  %1525 = vmatpush.msrb.mxu2 %v1510_v13 }
 0x986   :  { %1526 = vmatpush.msrb.mxu2 %v1509_v21 }
 0x988   :  { %1527 = vmatpush.msrb.mxu2 %v1508_v22 }
 0x98a   :  { %1528 = vmatpush.msrb.mxu2 %v1507_v28 }
 0x98c   :  { %1461 = vrot.lane.b32.xlu2 %v1431_v54, %s1794_s3  ;;  %1529 = vmatpush.msrb.mxu2 %v1506_v39 }
 0x98e   :  { %1530 = vmatpush.msrb.mxu2 %v1505_v41 }
 0x990   :  { %1531 = vmatpush.msrb.mxu2 %v1504_v11 }
 0x992   :  { %1532 = vmatpush.msrb.mxu2 %v1503_v2 }
 0x994   :  { %1533 = vmatpush.msrb.mxu2 %v1502_v3 }
 0x996   :  { %1534 = vmatpush.msrb.mxu2 %v1501_v5 }
 0x998   :  { %1535 = vmatpush.msrb.mxu2 %v1500_v33 }
 0x9d6   :  { %v1434_v16 = vpop.permute.xlu2 %1433 }
 0x9d7   :  { %v1436_v25 = vmax.f32 %v1429_v35, %v1434_v16  ;;  %v1578_v35 = vld [vmem:[%s3278_s11] sm:$0xff] }
 0x9de   :  { %v1448_v19 = vpop.permute.xlu2 %1447 }
 0x9e6   :  { %v1462_v63 = vpop.permute.xlu2 %1461 }
 0x9ed   :  { %v1442_v31 = vpop.permute.xlu1 %1441  ;;  %v1438_v34 = vpop.permute.xlu0 %1437 }
 0x9ee   :  { %v1440_v37 = vmax.f32 %v1436_v25, %v1438_v34 }
 0x9f0   :  { %v1444_v40 = vmax.f32 %v1440_v37, %v1442_v31 }
 0x9f2   :  { %v1445_v45 = vmax.f32 %v1444_v40, %v1430_v46 }
 0x9f4   :  { %v1450_v18 = vmax.f32 %v1445_v45, %v1448_v19 }
 0x9f5   :  { %v1452_v58 = vpop.permute.xlu0 %1451  ;;  %v1456_v27 = vpop.permute.xlu1 %1455 }
 0x9f6   :  { %v1454_v1 = vmax.f32 %v1450_v18, %v1452_v58 }
 0x9f8   :  { %v1458_v29 = vmax.f32 %v1454_v1, %v1456_v27 }
 0x9fa   :  { %v1459_v4 = vmax.f32 %v1458_v29, %v1431_v54 }
 0x9fc   :  { %v1464_v0 = vmax.f32 %v1459_v4, %v1462_v63 }
 0x9fe   :  { %1701 = vmatmul.msk.f32.vlgmr.msra.gmra.mxu2 %vm334_vm2, %v1464_v0 }
 0xa81   :  { %v1490_v30 = vpop.f32.mrf.mxu2 }
 0xa82   :  { %v1493_v47 = vadd.f32 %v1490_v30, %v3135_v42  ;;  %v1581_v42 = vld [vmem:[%s3278_s11 + $0x18] sm:$0xff]  ;;  %s1617_s11 = sshll.u32 %s3280_s13, 4  ;;  %s1618_s11 = int_to_ptr.hbm [resolvable:$true] %s1617_s11 }
 0xa83   :  { %1601 = vmatpush.msrb.mxu3 %v1581_v42 }
 0xa84   :  { %v1498_v49 = vadd.f32 %v1717_v26, %v1493_v47 }
 0xa85   :  { %1602 = vmatpush.msrb.mxu3 %v1580_v62 }
 0xa86   :  { %v1499_v32 = vmax.f32 %v1498_v49, 0.0 }
 0xa87   :  { %1603 = vmatpush.msrb.mxu3 %v1579_v14 }
 0xa88   :  { %1536 = vmatmul.f32.vlgmr.msrb.gmra.mxu2 %v1499_v32 }
 0xa89   :  { %1604 = vmatpush.msrb.mxu3 %v1578_v35 }
 0xb0b   :  { %v1537_v59 = vpop.f32.mrf.mxu2 }
 0xb0c   :  { %v1538_v55 = vadd.f32 %v1718_v51, %v1537_v59 }
 0xb0e   :  { %v1540_v48 = vmax.f32 %v1538_v55, 0.0 }
 0xb10   :  { %1702 = vmatmul.msk.f32.vlgmr.msra.gmra.mxu3 %vm1553_vm10, %v1540_v48 }
 0xb93   :  { %v1574_v24 = vpop.f32.mrf.mxu3 }
 0xb94   :  { %v1575_v20 = vadd.f32 %v1719_v17, %v1574_v24 }
 0xb96   :  { %v1577_v46 = vmax.f32 %v1575_v20, 0.0 }
 0xb98   :  { %1703 = vmatmul.msk.f32.vlgmr.msrb.gmra.mxu3 %vm334_vm2, %v1577_v46 }
 0xc1b   :  { %v1606_v52 = vpop.f32.mrf.mxu3 }
 0xc1c   :  { %v1607_v54 = vadd.f32 %v1720_v50, %v1606_v52 }
 0xc1e   :  { %1609 = vst [vmem:[#allocation2] sm:$0xff] %v1607_v54 }
 0xc1f   :  { %1620 = dma.vmem_to_hbm [thread:$0]  %s1616_s1, 128, %s1618_s11, [#allocation3]  }
 0xc20   :  { %1789 = dma.done.wait [#allocation3], 128  }
 0xc21   :  { %1790 = vsyncadd [#allocation3], 4294967168 }
 0xc22   :  { %1625 = vsyncpa [#allocation3], 1 }

</bundles_post_ra>
